<compile_context>
chip_gen: v6e
topology: v6e:2x2x1
jax: 0.10.0
libtpu: 0.0.40
codegen_flags: <defaults>
</compile_context>

<pallas_src>
import functools
import math

import jax
import jax.numpy as jnp
from jax.experimental import pallas as pl
from jax.experimental.pallas import tpu as pltpu

# ----------------------------- model config ---------------------------------
DIM = 32          # feature dim
DIM_FF = 64       # feed-forward hidden dim
N_HEAD = 4
N_BLOCK = 2
BATCH = 2
SEQ = 8
EPS = 1e-6


# ------------------------------ kernel ---------------------------------------
def _layer_norm(x, a, b, eps):
    """PyTorch-style LayerNorm from the module: unbiased std, divide by std+eps."""
    d = x.shape[-1]
    mean = jnp.mean(x, axis=-1, keepdims=True)
    var = jnp.sum((x - mean) ** 2, axis=-1, keepdims=True) / (d - 1)
    std = jnp.sqrt(var)
    return a * (x - mean) / (std + eps) + b


def video_encoder_kernel(
    x_ref,        # (B*S, D)
    wqkv_ref,     # (n_block, D, 3D)       fused [wq | wk | wv]
    bqkv_ref,     # (n_block, 1, 3D)       fused [bq | bk | bv]
    wout_ref,     # (n_block, D + DIM_FF, D)  rows 0:D = wo, rows D: = w2
    w1_ref,       # (n_block, D, DIM_FF)
    b1_ref,       # (n_block, 1, DIM_FF)
    vec_ref,      # (n_block, 6, D)        rows: bo, b2, ln1_a, ln1_b, ln2_a, ln2_b
    lnf_ref,      # (2, D)                 rows: lnf_a, lnf_b
    o_ref,        # (B*S, D)
    *, n_block, n_head, batch, eps,
):
    x = x_ref[...]                         # (B*S, D) — batch folded into sublanes
    BS, D = x.shape
    S = BS // batch
    d_k = D // n_head
    scale = 1.0 / math.sqrt(d_k)

    for l in range(n_block):               # n_block is static -> fully unrolled
        vecs = vec_ref[l]                  # (6, D)
        bo, b2 = vecs[0:1, :], vecs[1:2, :]
        ln1_a, ln1_b = vecs[2:3, :], vecs[3:4, :]
        ln2_a, ln2_b = vecs[4:5, :], vecs[5:6, :]
        w_ob = wout_ref[l]                 # (D + DIM_FF, D)
        wo, w2 = w_ob[0:D, :], w_ob[D:, :]

        # ---- sublayer 0: x + SelfAttention(LayerNorm(x)) ----
        xn = _layer_norm(x, ln1_a, ln1_b, eps)
        # fused QKV projection on the whole (B*S, D) slab
        qkv = jnp.dot(xn, wqkv_ref[l],
                      preferred_element_type=jnp.float32) + bqkv_ref[l]   # (BS, 3D)

        # stack (head, batch) into one leading batch axis: (n_head*B, S, d_k)
        def head_stack(base):
            parts = [
                qkv[:, base + h * d_k: base + (h + 1) * d_k].reshape(batch, S, d_k)
                for h in range(n_head)
            ]
            return jnp.concatenate(parts, axis=0)

        q = head_stack(0)
        k = head_stack(D)
        v = head_stack(2 * D)

        # batched scores + single softmax pass + batched PV
        s = jnp.einsum("bqd,bkd->bqk", q, k,
                       preferred_element_type=jnp.float32) * scale      # (HB, S, S)
        s = s - jnp.max(s, axis=-1, keepdims=True)
        e = jnp.exp(s)
        p = e / jnp.sum(e, axis=-1, keepdims=True)                      # exact softmax
        ctx = jnp.einsum("bqk,bkd->bqd", p, v,
                         preferred_element_type=jnp.float32)            # (HB, S, d_k)

        attn = jnp.concatenate(
            [ctx[h * batch:(h + 1) * batch].reshape(BS, d_k)
             for h in range(n_head)], axis=-1)                          # (BS, D)
        attn = jnp.dot(attn, wo, preferred_element_type=jnp.float32) + bo
        x = x + attn

        # ---- sublayer 1: x + FFN(LayerNorm(x)) ----
        xn = _layer_norm(x, ln2_a, ln2_b, eps)
        h1 = jnp.dot(xn, w1_ref[l], preferred_element_type=jnp.float32) + b1_ref[l]
        h1 = jnp.maximum(h1, 0.0)                                       # ReLU
        x = x + jnp.dot(h1, w2, preferred_element_type=jnp.float32) + b2

    # ---- final LayerNorm ----
    o_ref[...] = _layer_norm(x, lnf_ref[0:1, :], lnf_ref[1:2, :], eps)


# ------------------------------ wrapper --------------------------------------
def pack_params(params):
    """Pack the 19 parameter arrays into 7 contiguous VMEM inputs."""
    wqkv = jnp.concatenate([params["wq"], params["wk"], params["wv"]], axis=-1)
    bqkv = jnp.concatenate([params["bq"], params["bk"], params["bv"]], axis=-1)
    w_out = jnp.concatenate([params["wo"], params["w2"]], axis=1)      # (nb, D+FF, D)
    vecs = jnp.concatenate([params["bo"], params["b2"],
                            params["ln1_a"], params["ln1_b"],
                            params["ln2_a"], params["ln2_b"]], axis=1)  # (nb, 6, D)
    lnf = jnp.concatenate([params["lnf_a"], params["lnf_b"]], axis=0)   # (2, D)
    return (wqkv, bqkv, w_out, params["w1"], params["b1"], vecs, lnf)


def video_encoder(x, params, *, n_head=N_HEAD, eps=EPS):
    B, S, D = x.shape
    n_block = params["ln1_a"].shape[0]
    packed = pack_params(params)
    x2 = x.reshape(B * S, D)

    vmem_spec = functools.partial(pl.BlockSpec,
                                  memory_space=pltpu.MemorySpace.VMEM)
    kernel = functools.partial(video_encoder_kernel, n_block=n_block,
                               n_head=n_head, batch=B, eps=eps)

    out = pl.pallas_call(
        kernel,
        out_shape=jax.ShapeDtypeStruct((B * S, D), jnp.float32),
        in_specs=[vmem_spec() for _ in range(1 + len(packed))],
        out_specs=vmem_spec(),
    )(x2, *packed)
    return out.reshape(B, S, D)


# ------------------------- deterministic init --------------------------------
def init_params(key, dim, dim_ff, n_head, n_block):
    ks = jax.random.split(key, 12)

    def u(k, shape, fan_in):
        bound = 1.0 / math.sqrt(fan_in)
        return jax.random.uniform(k, shape, jnp.float32, -bound, bound)

    return {
        "ln1_a": jnp.ones((n_block, 1, dim), jnp.float32),
        "ln1_b": jnp.zeros((n_block, 1, dim), jnp.float32),
        "wq": u(ks[0], (n_block, dim, dim), dim),
        "bq": u(ks[1], (n_block, 1, dim), dim),
        "wk": u(ks[2], (n_block, dim, dim), dim),
        "bk": u(ks[3], (n_block, 1, dim), dim),
        "wv": u(ks[4], (n_block, dim, dim), dim),
        "bv": u(ks[5], (n_block, 1, dim), dim),
        "wo": u(ks[6], (n_block, dim, dim), dim),
        "bo": u(ks[7], (n_block, 1, dim), dim),
        "ln2_a": jnp.ones((n_block, 1, dim), jnp.float32),
        "ln2_b": jnp.zeros((n_block, 1, dim), jnp.float32),
        "w1": u(ks[8], (n_block, dim, dim_ff), dim),
        "b1": u(ks[9], (n_block, 1, dim_ff), dim),
        "w2": u(ks[10], (n_block, dim_ff, dim), dim_ff),
        "b2": u(ks[11], (n_block, 1, dim), dim_ff),
        "lnf_a": jnp.ones((1, dim), jnp.float32),
        "lnf_b": jnp.zeros((1, dim), jnp.float32),
    }


# --------------------------- pure-JAX reference -------------------------------
def reference(x, params, *, n_head=N_HEAD, eps=EPS):
    B, S, D = x.shape
    d_k = D // n_head
    n_block = params["ln1_a"].shape[0]

    def ln(z, a, b):
        mean = jnp.mean(z, axis=-1, keepdims=True)
        var = jnp.sum((z - mean) ** 2, axis=-1, keepdims=True) / (D - 1)
        return a * (z - mean) / (jnp.sqrt(var) + eps) + b

    for l in range(n_block):
        xn = ln(x, params["ln1_a"][l], params["ln1_b"][l])
        q = xn @ params["wq"][l] + params["bq"][l]
        k = xn @ params["wk"][l] + params["bk"][l]
        v = xn @ params["wv"][l] + params["bv"][l]
        q = q.reshape(B, S, n_head, d_k).transpose(0, 2, 1, 3)
        k = k.reshape(B, S, n_head, d_k).transpose(0, 2, 1, 3)
        v = v.reshape(B, S, n_head, d_k).transpose(0, 2, 1, 3)
        w = jnp.einsum("bhqd,bhkd->bhqk", q, k) / math.sqrt(d_k)
        p = jax.nn.softmax(w, axis=-1)
        a = jnp.einsum("bhqk,bhkd->bhqd", p, v)
        a = a.transpose(0, 2, 1, 3).reshape(B, S, D)
        x = x + (a @ params["wo"][l] + params["bo"][l])

        xn = ln(x, params["ln2_a"][l], params["ln2_b"][l])
        h1 = jax.nn.relu(xn @ params["w1"][l] + params["b1"][l])
        x = x + (h1 @ params["w2"][l] + params["b2"][l])

    return ln(x, params["lnf_a"], params["lnf_b"])


# --------------------------------- main ---------------------------------------
if __name__ == "__main__":
    key = jax.random.PRNGKey(0)
    k_x, k_p = jax.random.split(key)
    x = jax.random.normal(k_x, (BATCH, SEQ, DIM), jnp.float32)
    params = init_params(k_p, DIM, DIM_FF, N_HEAD, N_BLOCK)

    out = video_encoder(x, params)
    out = jax.block_until_ready(out)

    ref = jax.block_until_ready(reference(x, params))
    assert out.shape == (BATCH, SEQ, DIM)
    assert jnp.allclose(out, ref, rtol=1e-4, atol=1e-4), (
        float(jnp.max(jnp.abs(out - ref))))

    print("KERNEL_OK")
</pallas_src>

<mosaic_0001>
module attributes {stable_mosaic.version = 11 : i64} {
  func.func @video_encoder_kernel(%arg0: memref<16x32xf32, #tpu.memory_space<vmem>>, %arg1: memref<2x32x96xf32, #tpu.memory_space<vmem>>, %arg2: memref<2x1x96xf32, #tpu.memory_space<vmem>>, %arg3: memref<2x96x32xf32, #tpu.memory_space<vmem>>, %arg4: memref<2x32x64xf32, #tpu.memory_space<vmem>>, %arg5: memref<2x1x64xf32, #tpu.memory_space<vmem>>, %arg6: memref<2x6x32xf32, #tpu.memory_space<vmem>>, %arg7: memref<2x32xf32, #tpu.memory_space<vmem>>, %arg8: memref<16x32xf32, #tpu.memory_space<vmem>>) attributes {dimension_semantics = [], scalar_prefetch = 0 : i64, scratch_operands = 0 : i64, tpu.core_type = #tpu.core_type<tc>} {
    %c0 = arith.constant 0 : index
    %c0_0 = arith.constant 0 : index
    %0 = vector.load %arg0[%c0, %c0_0] : memref<16x32xf32, #tpu.memory_space<vmem>>, vector<16x32xf32>
    %c0_1 = arith.constant 0 : index
    %c0_2 = arith.constant 0 : index
    %c0_3 = arith.constant 0 : index
    %1 = vector.load %arg6[%c0_1, %c0_2, %c0_3] : memref<2x6x32xf32, #tpu.memory_space<vmem>>, vector<1x6x32xf32>
    %2 = vector.shape_cast %1 : vector<1x6x32xf32> to vector<6x32xf32>
    %3 = vector.extract_strided_slice %2 {offsets = [0, 0], sizes = [1, 32], strides = [1, 1]} : vector<6x32xf32> to vector<1x32xf32>
    %4 = vector.extract_strided_slice %2 {offsets = [1, 0], sizes = [1, 32], strides = [1, 1]} : vector<6x32xf32> to vector<1x32xf32>
    %5 = vector.extract_strided_slice %2 {offsets = [2, 0], sizes = [1, 32], strides = [1, 1]} : vector<6x32xf32> to vector<1x32xf32>
    %6 = vector.extract_strided_slice %2 {offsets = [3, 0], sizes = [1, 32], strides = [1, 1]} : vector<6x32xf32> to vector<1x32xf32>
    %7 = vector.extract_strided_slice %2 {offsets = [4, 0], sizes = [1, 32], strides = [1, 1]} : vector<6x32xf32> to vector<1x32xf32>
    %8 = vector.extract_strided_slice %2 {offsets = [5, 0], sizes = [1, 32], strides = [1, 1]} : vector<6x32xf32> to vector<1x32xf32>
    %c0_4 = arith.constant 0 : index
    %c0_5 = arith.constant 0 : index
    %c0_6 = arith.constant 0 : index
    %9 = vector.load %arg3[%c0_4, %c0_5, %c0_6] : memref<2x96x32xf32, #tpu.memory_space<vmem>>, vector<1x96x32xf32>
    %10 = vector.shape_cast %9 : vector<1x96x32xf32> to vector<96x32xf32>
    %11 = vector.extract_strided_slice %10 {offsets = [0, 0], sizes = [32, 32], strides = [1, 1]} : vector<96x32xf32> to vector<32x32xf32>
    %12 = vector.extract_strided_slice %10 {offsets = [32, 0], sizes = [64, 32], strides = [1, 1]} : vector<96x32xf32> to vector<64x32xf32>
    %cst = arith.constant dense<0.000000e+00> : vector<16xf32>
    %13 = vector.multi_reduction <add>, %0, %cst [1] : vector<16x32xf32> to vector<16xf32>
    %14 = vector.shape_cast %13 : vector<16xf32> to vector<16x1xf32>
    %cst_7 = arith.constant 3.200000e+01 : f32
    %15 = vector.broadcast %cst_7 : f32 to vector<16x1xf32>
    %16 = arith.divf %14, %15 : vector<16x1xf32>
    %17 = vector.broadcast %16 : vector<16x1xf32> to vector<16x32xf32>
    %18 = arith.subf %0, %17 : vector<16x32xf32>
    %19 = arith.mulf %18, %18 : vector<16x32xf32>
    %cst_8 = arith.constant dense<0.000000e+00> : vector<16xf32>
    %20 = vector.multi_reduction <add>, %19, %cst_8 [1] : vector<16x32xf32> to vector<16xf32>
    %21 = vector.shape_cast %20 : vector<16xf32> to vector<16x1xf32>
    %cst_9 = arith.constant 3.100000e+01 : f32
    %22 = vector.broadcast %cst_9 : f32 to vector<16x1xf32>
    %23 = arith.divf %21, %22 : vector<16x1xf32>
    %24 = math.sqrt %23 : vector<16x1xf32>
    %25 = vector.broadcast %16 : vector<16x1xf32> to vector<16x32xf32>
    %26 = arith.subf %0, %25 : vector<16x32xf32>
    %27 = vector.broadcast %5 : vector<1x32xf32> to vector<16x32xf32>
    %28 = arith.mulf %27, %26 : vector<16x32xf32>
    %cst_10 = arith.constant 9.99999997E-7 : f32
    %29 = vector.broadcast %cst_10 : f32 to vector<16x1xf32>
    %30 = arith.addf %24, %29 : vector<16x1xf32>
    %31 = vector.broadcast %30 : vector<16x1xf32> to vector<16x32xf32>
    %32 = arith.divf %28, %31 : vector<16x32xf32>
    %33 = vector.broadcast %6 : vector<1x32xf32> to vector<16x32xf32>
    %34 = arith.addf %32, %33 : vector<16x32xf32>
    %c0_11 = arith.constant 0 : index
    %c0_12 = arith.constant 0 : index
    %c0_13 = arith.constant 0 : index
    %35 = vector.load %arg1[%c0_11, %c0_12, %c0_13] : memref<2x32x96xf32, #tpu.memory_space<vmem>>, vector<1x32x96xf32>
    %36 = vector.shape_cast %35 : vector<1x32x96xf32> to vector<32x96xf32>
    %cst_14 = arith.constant dense<0.000000e+00> : vector<16x96xf32>
    %37 = tpu.matmul %34, %36, %cst_14 {dimension_numbers = #tpu.dot_dimension_numbers<[1], [0], [0], [1], [0, 0, 1, 1], [], []>} : vector<16x32xf32>, vector<32x96xf32>, vector<16x96xf32> -> vector<16x96xf32>
    %c0_15 = arith.constant 0 : index
    %c0_16 = arith.constant 0 : index
    %c0_17 = arith.constant 0 : index
    %38 = vector.load %arg2[%c0_15, %c0_16, %c0_17] : memref<2x1x96xf32, #tpu.memory_space<vmem>>, vector<1x1x96xf32>
    %39 = vector.shape_cast %38 : vector<1x1x96xf32> to vector<1x96xf32>
    %40 = vector.broadcast %39 : vector<1x96xf32> to vector<16x96xf32>
    %41 = arith.addf %37, %40 : vector<16x96xf32>
    %42 = vector.extract_strided_slice %41 {offsets = [0, 0], sizes = [16, 8], strides = [1, 1]} : vector<16x96xf32> to vector<16x8xf32>
    %43 = vector.shape_cast %42 : vector<16x8xf32> to vector<2x8x8xf32>
    %44 = vector.extract_strided_slice %41 {offsets = [0, 8], sizes = [16, 8], strides = [1, 1]} : vector<16x96xf32> to vector<16x8xf32>
    %45 = vector.shape_cast %44 : vector<16x8xf32> to vector<2x8x8xf32>
    %46 = vector.extract_strided_slice %41 {offsets = [0, 16], sizes = [16, 8], strides = [1, 1]} : vector<16x96xf32> to vector<16x8xf32>
    %47 = vector.shape_cast %46 : vector<16x8xf32> to vector<2x8x8xf32>
    %48 = vector.extract_strided_slice %41 {offsets = [0, 24], sizes = [16, 8], strides = [1, 1]} : vector<16x96xf32> to vector<16x8xf32>
    %49 = vector.shape_cast %48 : vector<16x8xf32> to vector<2x8x8xf32>
    %50 = tpu.concatenate %43, %45, %47, %49 in 0 : vector<2x8x8xf32>, vector<2x8x8xf32>, vector<2x8x8xf32>, vector<2x8x8xf32> -> vector<8x8x8xf32>
    %51 = vector.extract_strided_slice %41 {offsets = [0, 32], sizes = [16, 8], strides = [1, 1]} : vector<16x96xf32> to vector<16x8xf32>
    %52 = vector.shape_cast %51 : vector<16x8xf32> to vector<2x8x8xf32>
    %53 = vector.extract_strided_slice %41 {offsets = [0, 40], sizes = [16, 8], strides = [1, 1]} : vector<16x96xf32> to vector<16x8xf32>
    %54 = vector.shape_cast %53 : vector<16x8xf32> to vector<2x8x8xf32>
    %55 = vector.extract_strided_slice %41 {offsets = [0, 48], sizes = [16, 8], strides = [1, 1]} : vector<16x96xf32> to vector<16x8xf32>
    %56 = vector.shape_cast %55 : vector<16x8xf32> to vector<2x8x8xf32>
    %57 = vector.extract_strided_slice %41 {offsets = [0, 56], sizes = [16, 8], strides = [1, 1]} : vector<16x96xf32> to vector<16x8xf32>
    %58 = vector.shape_cast %57 : vector<16x8xf32> to vector<2x8x8xf32>
    %59 = tpu.concatenate %52, %54, %56, %58 in 0 : vector<2x8x8xf32>, vector<2x8x8xf32>, vector<2x8x8xf32>, vector<2x8x8xf32> -> vector<8x8x8xf32>
    %60 = vector.extract_strided_slice %41 {offsets = [0, 64], sizes = [16, 8], strides = [1, 1]} : vector<16x96xf32> to vector<16x8xf32>
    %61 = vector.shape_cast %60 : vector<16x8xf32> to vector<2x8x8xf32>
    %62 = vector.extract_strided_slice %41 {offsets = [0, 72], sizes = [16, 8], strides = [1, 1]} : vector<16x96xf32> to vector<16x8xf32>
    %63 = vector.shape_cast %62 : vector<16x8xf32> to vector<2x8x8xf32>
    %64 = vector.extract_strided_slice %41 {offsets = [0, 80], sizes = [16, 8], strides = [1, 1]} : vector<16x96xf32> to vector<16x8xf32>
    %65 = vector.shape_cast %64 : vector<16x8xf32> to vector<2x8x8xf32>
    %66 = vector.extract_strided_slice %41 {offsets = [0, 88], sizes = [16, 8], strides = [1, 1]} : vector<16x96xf32> to vector<16x8xf32>
    %67 = vector.shape_cast %66 : vector<16x8xf32> to vector<2x8x8xf32>
    %68 = tpu.concatenate %61, %63, %65, %67 in 0 : vector<2x8x8xf32>, vector<2x8x8xf32>, vector<2x8x8xf32>, vector<2x8x8xf32> -> vector<8x8x8xf32>
    "tpu.trace_start"() <{level = 10 : i32, message = "bqd,bkd->bqk"}> : () -> ()
    %cst_18 = arith.constant dense<0.000000e+00> : vector<8x8x8xf32>
    %69 = tpu.matmul %50, %59, %cst_18 {dimension_numbers = #tpu.dot_dimension_numbers<[2], [2], [1], [1], [0, 0, 0, 1, 1, 1], [0], [0]>} : vector<8x8x8xf32>, vector<8x8x8xf32>, vector<8x8x8xf32> -> vector<8x8x8xf32>
    "tpu.trace_stop"() : () -> ()
    %cst_19 = arith.constant 0.353553385 : f32
    %70 = vector.broadcast %cst_19 : f32 to vector<8x8x8xf32>
    %71 = arith.mulf %69, %70 : vector<8x8x8xf32>
    %cst_20 = arith.constant dense<0xFF800000> : vector<8x8xf32>
    %72 = vector.multi_reduction <maximumf>, %71, %cst_20 [2] : vector<8x8x8xf32> to vector<8x8xf32>
    %73 = vector.shape_cast %72 : vector<8x8xf32> to vector<8x8x1xf32>
    %74 = vector.broadcast %73 : vector<8x8x1xf32> to vector<8x8x8xf32>
    %75 = arith.subf %71, %74 : vector<8x8x8xf32>
    %76 = math.exp %75 : vector<8x8x8xf32>
    %cst_21 = arith.constant dense<0.000000e+00> : vector<8x8xf32>
    %77 = vector.multi_reduction <add>, %76, %cst_21 [2] : vector<8x8x8xf32> to vector<8x8xf32>
    %78 = vector.shape_cast %77 : vector<8x8xf32> to vector<8x8x1xf32>
    %79 = vector.broadcast %78 : vector<8x8x1xf32> to vector<8x8x8xf32>
    %80 = arith.divf %76, %79 : vector<8x8x8xf32>
    "tpu.trace_start"() <{level = 10 : i32, message = "bqk,bkd->bqd"}> : () -> ()
    %cst_22 = arith.constant dense<0.000000e+00> : vector<8x8x8xf32>
    %81 = tpu.matmul %80, %68, %cst_22 {dimension_numbers = #tpu.dot_dimension_numbers<[2], [1], [1], [2], [0, 0, 0, 1, 1, 2], [0], [0]>} : vector<8x8x8xf32>, vector<8x8x8xf32>, vector<8x8x8xf32> -> vector<8x8x8xf32>
    "tpu.trace_stop"() : () -> ()
    %82 = vector.extract_strided_slice %81 {offsets = [0, 0, 0], sizes = [2, 8, 8], strides = [1, 1, 1]} : vector<8x8x8xf32> to vector<2x8x8xf32>
    %83 = vector.shape_cast %82 : vector<2x8x8xf32> to vector<16x8xf32>
    %84 = vector.extract_strided_slice %81 {offsets = [2, 0, 0], sizes = [2, 8, 8], strides = [1, 1, 1]} : vector<8x8x8xf32> to vector<2x8x8xf32>
    %85 = vector.shape_cast %84 : vector<2x8x8xf32> to vector<16x8xf32>
    %86 = vector.extract_strided_slice %81 {offsets = [4, 0, 0], sizes = [2, 8, 8], strides = [1, 1, 1]} : vector<8x8x8xf32> to vector<2x8x8xf32>
    %87 = vector.shape_cast %86 : vector<2x8x8xf32> to vector<16x8xf32>
    %88 = vector.extract_strided_slice %81 {offsets = [6, 0, 0], sizes = [2, 8, 8], strides = [1, 1, 1]} : vector<8x8x8xf32> to vector<2x8x8xf32>
    %89 = vector.shape_cast %88 : vector<2x8x8xf32> to vector<16x8xf32>
    %90 = tpu.concatenate %83, %85, %87, %89 in 1 : vector<16x8xf32>, vector<16x8xf32>, vector<16x8xf32>, vector<16x8xf32> -> vector<16x32xf32>
    %cst_23 = arith.constant dense<0.000000e+00> : vector<16x32xf32>
    %91 = tpu.matmul %90, %11, %cst_23 {dimension_numbers = #tpu.dot_dimension_numbers<[1], [0], [0], [1], [0, 0, 1, 1], [], []>} : vector<16x32xf32>, vector<32x32xf32>, vector<16x32xf32> -> vector<16x32xf32>
    %92 = vector.broadcast %3 : vector<1x32xf32> to vector<16x32xf32>
    %93 = arith.addf %91, %92 : vector<16x32xf32>
    %94 = arith.addf %0, %93 : vector<16x32xf32>
    %cst_24 = arith.constant dense<0.000000e+00> : vector<16xf32>
    %95 = vector.multi_reduction <add>, %94, %cst_24 [1] : vector<16x32xf32> to vector<16xf32>
    %96 = vector.shape_cast %95 : vector<16xf32> to vector<16x1xf32>
    %cst_25 = arith.constant 3.200000e+01 : f32
    %97 = vector.broadcast %cst_25 : f32 to vector<16x1xf32>
    %98 = arith.divf %96, %97 : vector<16x1xf32>
    %99 = vector.broadcast %98 : vector<16x1xf32> to vector<16x32xf32>
    %100 = arith.subf %94, %99 : vector<16x32xf32>
    %101 = arith.mulf %100, %100 : vector<16x32xf32>
    %cst_26 = arith.constant dense<0.000000e+00> : vector<16xf32>
    %102 = vector.multi_reduction <add>, %101, %cst_26 [1] : vector<16x32xf32> to vector<16xf32>
    %103 = vector.shape_cast %102 : vector<16xf32> to vector<16x1xf32>
    %cst_27 = arith.constant 3.100000e+01 : f32
    %104 = vector.broadcast %cst_27 : f32 to vector<16x1xf32>
    %105 = arith.divf %103, %104 : vector<16x1xf32>
    %106 = math.sqrt %105 : vector<16x1xf32>
    %107 = vector.broadcast %98 : vector<16x1xf32> to vector<16x32xf32>
    %108 = arith.subf %94, %107 : vector<16x32xf32>
    %109 = vector.broadcast %7 : vector<1x32xf32> to vector<16x32xf32>
    %110 = arith.mulf %109, %108 : vector<16x32xf32>
    %cst_28 = arith.constant 9.99999997E-7 : f32
    %111 = vector.broadcast %cst_28 : f32 to vector<16x1xf32>
    %112 = arith.addf %106, %111 : vector<16x1xf32>
    %113 = vector.broadcast %112 : vector<16x1xf32> to vector<16x32xf32>
    %114 = arith.divf %110, %113 : vector<16x32xf32>
    %115 = vector.broadcast %8 : vector<1x32xf32> to vector<16x32xf32>
    %116 = arith.addf %114, %115 : vector<16x32xf32>
    %c0_29 = arith.constant 0 : index
    %c0_30 = arith.constant 0 : index
    %c0_31 = arith.constant 0 : index
    %117 = vector.load %arg4[%c0_29, %c0_30, %c0_31] : memref<2x32x64xf32, #tpu.memory_space<vmem>>, vector<1x32x64xf32>
    %118 = vector.shape_cast %117 : vector<1x32x64xf32> to vector<32x64xf32>
    %cst_32 = arith.constant dense<0.000000e+00> : vector<16x64xf32>
    %119 = tpu.matmul %116, %118, %cst_32 {dimension_numbers = #tpu.dot_dimension_numbers<[1], [0], [0], [1], [0, 0, 1, 1], [], []>} : vector<16x32xf32>, vector<32x64xf32>, vector<16x64xf32> -> vector<16x64xf32>
    %c0_33 = arith.constant 0 : index
    %c0_34 = arith.constant 0 : index
    %c0_35 = arith.constant 0 : index
    %120 = vector.load %arg5[%c0_33, %c0_34, %c0_35] : memref<2x1x64xf32, #tpu.memory_space<vmem>>, vector<1x1x64xf32>
    %121 = vector.shape_cast %120 : vector<1x1x64xf32> to vector<1x64xf32>
    %122 = vector.broadcast %121 : vector<1x64xf32> to vector<16x64xf32>
    %123 = arith.addf %119, %122 : vector<16x64xf32>
    %cst_36 = arith.constant 0.000000e+00 : f32
    %124 = vector.broadcast %cst_36 : f32 to vector<16x64xf32>
    %125 = arith.maximumf %123, %124 : vector<16x64xf32>
    %cst_37 = arith.constant dense<0.000000e+00> : vector<16x32xf32>
    %126 = tpu.matmul %125, %12, %cst_37 {dimension_numbers = #tpu.dot_dimension_numbers<[1], [0], [0], [1], [0, 0, 1, 1], [], []>} : vector<16x64xf32>, vector<64x32xf32>, vector<16x32xf32> -> vector<16x32xf32>
    %127 = arith.addf %94, %126 : vector<16x32xf32>
    %128 = vector.broadcast %4 : vector<1x32xf32> to vector<16x32xf32>
    %129 = arith.addf %127, %128 : vector<16x32xf32>
    %c1 = arith.constant 1 : index
    %c0_38 = arith.constant 0 : index
    %c0_39 = arith.constant 0 : index
    %130 = vector.load %arg6[%c1, %c0_38, %c0_39] : memref<2x6x32xf32, #tpu.memory_space<vmem>>, vector<1x6x32xf32>
    %131 = vector.shape_cast %130 : vector<1x6x32xf32> to vector<6x32xf32>
    %132 = vector.extract_strided_slice %131 {offsets = [0, 0], sizes = [1, 32], strides = [1, 1]} : vector<6x32xf32> to vector<1x32xf32>
    %133 = vector.extract_strided_slice %131 {offsets = [1, 0], sizes = [1, 32], strides = [1, 1]} : vector<6x32xf32> to vector<1x32xf32>
    %134 = vector.extract_strided_slice %131 {offsets = [2, 0], sizes = [1, 32], strides = [1, 1]} : vector<6x32xf32> to vector<1x32xf32>
    %135 = vector.extract_strided_slice %131 {offsets = [3, 0], sizes = [1, 32], strides = [1, 1]} : vector<6x32xf32> to vector<1x32xf32>
    %136 = vector.extract_strided_slice %131 {offsets = [4, 0], sizes = [1, 32], strides = [1, 1]} : vector<6x32xf32> to vector<1x32xf32>
    %137 = vector.extract_strided_slice %131 {offsets = [5, 0], sizes = [1, 32], strides = [1, 1]} : vector<6x32xf32> to vector<1x32xf32>
    %c1_40 = arith.constant 1 : index
    %c0_41 = arith.constant 0 : index
    %c0_42 = arith.constant 0 : index
    %138 = vector.load %arg3[%c1_40, %c0_41, %c0_42] : memref<2x96x32xf32, #tpu.memory_space<vmem>>, vector<1x96x32xf32>
    %139 = vector.shape_cast %138 : vector<1x96x32xf32> to vector<96x32xf32>
    %140 = vector.extract_strided_slice %139 {offsets = [0, 0], sizes = [32, 32], strides = [1, 1]} : vector<96x32xf32> to vector<32x32xf32>
    %141 = vector.extract_strided_slice %139 {offsets = [32, 0], sizes = [64, 32], strides = [1, 1]} : vector<96x32xf32> to vector<64x32xf32>
    %cst_43 = arith.constant dense<0.000000e+00> : vector<16xf32>
    %142 = vector.multi_reduction <add>, %129, %cst_43 [1] : vector<16x32xf32> to vector<16xf32>
    %143 = vector.shape_cast %142 : vector<16xf32> to vector<16x1xf32>
    %cst_44 = arith.constant 3.200000e+01 : f32
    %144 = vector.broadcast %cst_44 : f32 to vector<16x1xf32>
    %145 = arith.divf %143, %144 : vector<16x1xf32>
    %146 = vector.broadcast %145 : vector<16x1xf32> to vector<16x32xf32>
    %147 = arith.subf %129, %146 : vector<16x32xf32>
    %148 = arith.mulf %147, %147 : vector<16x32xf32>
    %cst_45 = arith.constant dense<0.000000e+00> : vector<16xf32>
    %149 = vector.multi_reduction <add>, %148, %cst_45 [1] : vector<16x32xf32> to vector<16xf32>
    %150 = vector.shape_cast %149 : vector<16xf32> to vector<16x1xf32>
    %cst_46 = arith.constant 3.100000e+01 : f32
    %151 = vector.broadcast %cst_46 : f32 to vector<16x1xf32>
    %152 = arith.divf %150, %151 : vector<16x1xf32>
    %153 = math.sqrt %152 : vector<16x1xf32>
    %154 = vector.broadcast %145 : vector<16x1xf32> to vector<16x32xf32>
    %155 = arith.subf %129, %154 : vector<16x32xf32>
    %156 = vector.broadcast %134 : vector<1x32xf32> to vector<16x32xf32>
    %157 = arith.mulf %156, %155 : vector<16x32xf32>
    %cst_47 = arith.constant 9.99999997E-7 : f32
    %158 = vector.broadcast %cst_47 : f32 to vector<16x1xf32>
    %159 = arith.addf %153, %158 : vector<16x1xf32>
    %160 = vector.broadcast %159 : vector<16x1xf32> to vector<16x32xf32>
    %161 = arith.divf %157, %160 : vector<16x32xf32>
    %162 = vector.broadcast %135 : vector<1x32xf32> to vector<16x32xf32>
    %163 = arith.addf %161, %162 : vector<16x32xf32>
    %c1_48 = arith.constant 1 : index
    %c0_49 = arith.constant 0 : index
    %c0_50 = arith.constant 0 : index
    %164 = vector.load %arg1[%c1_48, %c0_49, %c0_50] : memref<2x32x96xf32, #tpu.memory_space<vmem>>, vector<1x32x96xf32>
    %165 = vector.shape_cast %164 : vector<1x32x96xf32> to vector<32x96xf32>
    %cst_51 = arith.constant dense<0.000000e+00> : vector<16x96xf32>
    %166 = tpu.matmul %163, %165, %cst_51 {dimension_numbers = #tpu.dot_dimension_numbers<[1], [0], [0], [1], [0, 0, 1, 1], [], []>} : vector<16x32xf32>, vector<32x96xf32>, vector<16x96xf32> -> vector<16x96xf32>
    %c1_52 = arith.constant 1 : index
    %c0_53 = arith.constant 0 : index
    %c0_54 = arith.constant 0 : index
    %167 = vector.load %arg2[%c1_52, %c0_53, %c0_54] : memref<2x1x96xf32, #tpu.memory_space<vmem>>, vector<1x1x96xf32>
    %168 = vector.shape_cast %167 : vector<1x1x96xf32> to vector<1x96xf32>
    %169 = vector.broadcast %168 : vector<1x96xf32> to vector<16x96xf32>
    %170 = arith.addf %166, %169 : vector<16x96xf32>
    %171 = vector.extract_strided_slice %170 {offsets = [0, 0], sizes = [16, 8], strides = [1, 1]} : vector<16x96xf32> to vector<16x8xf32>
    %172 = vector.shape_cast %171 : vector<16x8xf32> to vector<2x8x8xf32>
    %173 = vector.extract_strided_slice %170 {offsets = [0, 8], sizes = [16, 8], strides = [1, 1]} : vector<16x96xf32> to vector<16x8xf32>
    %174 = vector.shape_cast %173 : vector<16x8xf32> to vector<2x8x8xf32>
    %175 = vector.extract_strided_slice %170 {offsets = [0, 16], sizes = [16, 8], strides = [1, 1]} : vector<16x96xf32> to vector<16x8xf32>
    %176 = vector.shape_cast %175 : vector<16x8xf32> to vector<2x8x8xf32>
    %177 = vector.extract_strided_slice %170 {offsets = [0, 24], sizes = [16, 8], strides = [1, 1]} : vector<16x96xf32> to vector<16x8xf32>
    %178 = vector.shape_cast %177 : vector<16x8xf32> to vector<2x8x8xf32>
    %179 = tpu.concatenate %172, %174, %176, %178 in 0 : vector<2x8x8xf32>, vector<2x8x8xf32>, vector<2x8x8xf32>, vector<2x8x8xf32> -> vector<8x8x8xf32>
    %180 = vector.extract_strided_slice %170 {offsets = [0, 32], sizes = [16, 8], strides = [1, 1]} : vector<16x96xf32> to vector<16x8xf32>
    %181 = vector.shape_cast %180 : vector<16x8xf32> to vector<2x8x8xf32>
    %182 = vector.extract_strided_slice %170 {offsets = [0, 40], sizes = [16, 8], strides = [1, 1]} : vector<16x96xf32> to vector<16x8xf32>
    %183 = vector.shape_cast %182 : vector<16x8xf32> to vector<2x8x8xf32>
    %184 = vector.extract_strided_slice %170 {offsets = [0, 48], sizes = [16, 8], strides = [1, 1]} : vector<16x96xf32> to vector<16x8xf32>
    %185 = vector.shape_cast %184 : vector<16x8xf32> to vector<2x8x8xf32>
    %186 = vector.extract_strided_slice %170 {offsets = [0, 56], sizes = [16, 8], strides = [1, 1]} : vector<16x96xf32> to vector<16x8xf32>
    %187 = vector.shape_cast %186 : vector<16x8xf32> to vector<2x8x8xf32>
    %188 = tpu.concatenate %181, %183, %185, %187 in 0 : vector<2x8x8xf32>, vector<2x8x8xf32>, vector<2x8x8xf32>, vector<2x8x8xf32> -> vector<8x8x8xf32>
    %189 = vector.extract_strided_slice %170 {offsets = [0, 64], sizes = [16, 8], strides = [1, 1]} : vector<16x96xf32> to vector<16x8xf32>
    %190 = vector.shape_cast %189 : vector<16x8xf32> to vector<2x8x8xf32>
    %191 = vector.extract_strided_slice %170 {offsets = [0, 72], sizes = [16, 8], strides = [1, 1]} : vector<16x96xf32> to vector<16x8xf32>
    %192 = vector.shape_cast %191 : vector<16x8xf32> to vector<2x8x8xf32>
    %193 = vector.extract_strided_slice %170 {offsets = [0, 80], sizes = [16, 8], strides = [1, 1]} : vector<16x96xf32> to vector<16x8xf32>
    %194 = vector.shape_cast %193 : vector<16x8xf32> to vector<2x8x8xf32>
    %195 = vector.extract_strided_slice %170 {offsets = [0, 88], sizes = [16, 8], strides = [1, 1]} : vector<16x96xf32> to vector<16x8xf32>
    %196 = vector.shape_cast %195 : vector<16x8xf32> to vector<2x8x8xf32>
    %197 = tpu.concatenate %190, %192, %194, %196 in 0 : vector<2x8x8xf32>, vector<2x8x8xf32>, vector<2x8x8xf32>, vector<2x8x8xf32> -> vector<8x8x8xf32>
    "tpu.trace_start"() <{level = 10 : i32, message = "bqd,bkd->bqk"}> : () -> ()
    %cst_55 = arith.constant dense<0.000000e+00> : vector<8x8x8xf32>
    %198 = tpu.matmul %179, %188, %cst_55 {dimension_numbers = #tpu.dot_dimension_numbers<[2], [2], [1], [1], [0, 0, 0, 1, 1, 1], [0], [0]>} : vector<8x8x8xf32>, vector<8x8x8xf32>, vector<8x8x8xf32> -> vector<8x8x8xf32>
    "tpu.trace_stop"() : () -> ()
    %cst_56 = arith.constant 0.353553385 : f32
    %199 = vector.broadcast %cst_56 : f32 to vector<8x8x8xf32>
    %200 = arith.mulf %198, %199 : vector<8x8x8xf32>
    %cst_57 = arith.constant dense<0xFF800000> : vector<8x8xf32>
    %201 = vector.multi_reduction <maximumf>, %200, %cst_57 [2] : vector<8x8x8xf32> to vector<8x8xf32>
    %202 = vector.shape_cast %201 : vector<8x8xf32> to vector<8x8x1xf32>
    %203 = vector.broadcast %202 : vector<8x8x1xf32> to vector<8x8x8xf32>
    %204 = arith.subf %200, %203 : vector<8x8x8xf32>
    %205 = math.exp %204 : vector<8x8x8xf32>
    %cst_58 = arith.constant dense<0.000000e+00> : vector<8x8xf32>
    %206 = vector.multi_reduction <add>, %205, %cst_58 [2] : vector<8x8x8xf32> to vector<8x8xf32>
    %207 = vector.shape_cast %206 : vector<8x8xf32> to vector<8x8x1xf32>
    %208 = vector.broadcast %207 : vector<8x8x1xf32> to vector<8x8x8xf32>
    %209 = arith.divf %205, %208 : vector<8x8x8xf32>
    "tpu.trace_start"() <{level = 10 : i32, message = "bqk,bkd->bqd"}> : () -> ()
    %cst_59 = arith.constant dense<0.000000e+00> : vector<8x8x8xf32>
    %210 = tpu.matmul %209, %197, %cst_59 {dimension_numbers = #tpu.dot_dimension_numbers<[2], [1], [1], [2], [0, 0, 0, 1, 1, 2], [0], [0]>} : vector<8x8x8xf32>, vector<8x8x8xf32>, vector<8x8x8xf32> -> vector<8x8x8xf32>
    "tpu.trace_stop"() : () -> ()
    %211 = vector.extract_strided_slice %210 {offsets = [0, 0, 0], sizes = [2, 8, 8], strides = [1, 1, 1]} : vector<8x8x8xf32> to vector<2x8x8xf32>
    %212 = vector.shape_cast %211 : vector<2x8x8xf32> to vector<16x8xf32>
    %213 = vector.extract_strided_slice %210 {offsets = [2, 0, 0], sizes = [2, 8, 8], strides = [1, 1, 1]} : vector<8x8x8xf32> to vector<2x8x8xf32>
    %214 = vector.shape_cast %213 : vector<2x8x8xf32> to vector<16x8xf32>
    %215 = vector.extract_strided_slice %210 {offsets = [4, 0, 0], sizes = [2, 8, 8], strides = [1, 1, 1]} : vector<8x8x8xf32> to vector<2x8x8xf32>
    %216 = vector.shape_cast %215 : vector<2x8x8xf32> to vector<16x8xf32>
    %217 = vector.extract_strided_slice %210 {offsets = [6, 0, 0], sizes = [2, 8, 8], strides = [1, 1, 1]} : vector<8x8x8xf32> to vector<2x8x8xf32>
    %218 = vector.shape_cast %217 : vector<2x8x8xf32> to vector<16x8xf32>
    %219 = tpu.concatenate %212, %214, %216, %218 in 1 : vector<16x8xf32>, vector<16x8xf32>, vector<16x8xf32>, vector<16x8xf32> -> vector<16x32xf32>
    %cst_60 = arith.constant dense<0.000000e+00> : vector<16x32xf32>
    %220 = tpu.matmul %219, %140, %cst_60 {dimension_numbers = #tpu.dot_dimension_numbers<[1], [0], [0], [1], [0, 0, 1, 1], [], []>} : vector<16x32xf32>, vector<32x32xf32>, vector<16x32xf32> -> vector<16x32xf32>
    %221 = vector.broadcast %132 : vector<1x32xf32> to vector<16x32xf32>
    %222 = arith.addf %220, %221 : vector<16x32xf32>
    %223 = arith.addf %129, %222 : vector<16x32xf32>
    %cst_61 = arith.constant dense<0.000000e+00> : vector<16xf32>
    %224 = vector.multi_reduction <add>, %223, %cst_61 [1] : vector<16x32xf32> to vector<16xf32>
    %225 = vector.shape_cast %224 : vector<16xf32> to vector<16x1xf32>
    %cst_62 = arith.constant 3.200000e+01 : f32
    %226 = vector.broadcast %cst_62 : f32 to vector<16x1xf32>
    %227 = arith.divf %225, %226 : vector<16x1xf32>
    %228 = vector.broadcast %227 : vector<16x1xf32> to vector<16x32xf32>
    %229 = arith.subf %223, %228 : vector<16x32xf32>
    %230 = arith.mulf %229, %229 : vector<16x32xf32>
    %cst_63 = arith.constant dense<0.000000e+00> : vector<16xf32>
    %231 = vector.multi_reduction <add>, %230, %cst_63 [1] : vector<16x32xf32> to vector<16xf32>
    %232 = vector.shape_cast %231 : vector<16xf32> to vector<16x1xf32>
    %cst_64 = arith.constant 3.100000e+01 : f32
    %233 = vector.broadcast %cst_64 : f32 to vector<16x1xf32>
    %234 = arith.divf %232, %233 : vector<16x1xf32>
    %235 = math.sqrt %234 : vector<16x1xf32>
    %236 = vector.broadcast %227 : vector<16x1xf32> to vector<16x32xf32>
    %237 = arith.subf %223, %236 : vector<16x32xf32>
    %238 = vector.broadcast %136 : vector<1x32xf32> to vector<16x32xf32>
    %239 = arith.mulf %238, %237 : vector<16x32xf32>
    %cst_65 = arith.constant 9.99999997E-7 : f32
    %240 = vector.broadcast %cst_65 : f32 to vector<16x1xf32>
    %241 = arith.addf %235, %240 : vector<16x1xf32>
    %242 = vector.broadcast %241 : vector<16x1xf32> to vector<16x32xf32>
    %243 = arith.divf %239, %242 : vector<16x32xf32>
    %244 = vector.broadcast %137 : vector<1x32xf32> to vector<16x32xf32>
    %245 = arith.addf %243, %244 : vector<16x32xf32>
    %c1_66 = arith.constant 1 : index
    %c0_67 = arith.constant 0 : index
    %c0_68 = arith.constant 0 : index
    %246 = vector.load %arg4[%c1_66, %c0_67, %c0_68] : memref<2x32x64xf32, #tpu.memory_space<vmem>>, vector<1x32x64xf32>
    %247 = vector.shape_cast %246 : vector<1x32x64xf32> to vector<32x64xf32>
    %cst_69 = arith.constant dense<0.000000e+00> : vector<16x64xf32>
    %248 = tpu.matmul %245, %247, %cst_69 {dimension_numbers = #tpu.dot_dimension_numbers<[1], [0], [0], [1], [0, 0, 1, 1], [], []>} : vector<16x32xf32>, vector<32x64xf32>, vector<16x64xf32> -> vector<16x64xf32>
    %c1_70 = arith.constant 1 : index
    %c0_71 = arith.constant 0 : index
    %c0_72 = arith.constant 0 : index
    %249 = vector.load %arg5[%c1_70, %c0_71, %c0_72] : memref<2x1x64xf32, #tpu.memory_space<vmem>>, vector<1x1x64xf32>
    %250 = vector.shape_cast %249 : vector<1x1x64xf32> to vector<1x64xf32>
    %251 = vector.broadcast %250 : vector<1x64xf32> to vector<16x64xf32>
    %252 = arith.addf %248, %251 : vector<16x64xf32>
    %cst_73 = arith.constant 0.000000e+00 : f32
    %253 = vector.broadcast %cst_73 : f32 to vector<16x64xf32>
    %254 = arith.maximumf %252, %253 : vector<16x64xf32>
    %cst_74 = arith.constant dense<0.000000e+00> : vector<16x32xf32>
    %255 = tpu.matmul %254, %141, %cst_74 {dimension_numbers = #tpu.dot_dimension_numbers<[1], [0], [0], [1], [0, 0, 1, 1], [], []>} : vector<16x64xf32>, vector<64x32xf32>, vector<16x32xf32> -> vector<16x32xf32>
    %256 = arith.addf %223, %255 : vector<16x32xf32>
    %257 = vector.broadcast %133 : vector<1x32xf32> to vector<16x32xf32>
    %258 = arith.addf %256, %257 : vector<16x32xf32>
    %c0_75 = arith.constant 0 : index
    %c0_76 = arith.constant 0 : index
    %259 = vector.load %arg7[%c0_75, %c0_76] : memref<2x32xf32, #tpu.memory_space<vmem>>, vector<1x32xf32>
    %c1_77 = arith.constant 1 : index
    %c0_78 = arith.constant 0 : index
    %260 = vector.load %arg7[%c1_77, %c0_78] : memref<2x32xf32, #tpu.memory_space<vmem>>, vector<1x32xf32>
    %cst_79 = arith.constant dense<0.000000e+00> : vector<16xf32>
    %261 = vector.multi_reduction <add>, %258, %cst_79 [1] : vector<16x32xf32> to vector<16xf32>
    %262 = vector.shape_cast %261 : vector<16xf32> to vector<16x1xf32>
    %cst_80 = arith.constant 3.200000e+01 : f32
    %263 = vector.broadcast %cst_80 : f32 to vector<16x1xf32>
    %264 = arith.divf %262, %263 : vector<16x1xf32>
    %265 = vector.broadcast %264 : vector<16x1xf32> to vector<16x32xf32>
    %266 = arith.subf %258, %265 : vector<16x32xf32>
    %267 = arith.mulf %266, %266 : vector<16x32xf32>
    %cst_81 = arith.constant dense<0.000000e+00> : vector<16xf32>
    %268 = vector.multi_reduction <add>, %267, %cst_81 [1] : vector<16x32xf32> to vector<16xf32>
    %269 = vector.shape_cast %268 : vector<16xf32> to vector<16x1xf32>
    %cst_82 = arith.constant 3.100000e+01 : f32
    %270 = vector.broadcast %cst_82 : f32 to vector<16x1xf32>
    %271 = arith.divf %269, %270 : vector<16x1xf32>
    %272 = math.sqrt %271 : vector<16x1xf32>
    %273 = vector.broadcast %264 : vector<16x1xf32> to vector<16x32xf32>
    %274 = arith.subf %258, %273 : vector<16x32xf32>
    %275 = vector.broadcast %259 : vector<1x32xf32> to vector<16x32xf32>
    %276 = arith.mulf %275, %274 : vector<16x32xf32>
    %cst_83 = arith.constant 9.99999997E-7 : f32
    %277 = vector.broadcast %cst_83 : f32 to vector<16x1xf32>
    %278 = arith.addf %272, %277 : vector<16x1xf32>
    %279 = vector.broadcast %278 : vector<16x1xf32> to vector<16x32xf32>
    %280 = arith.divf %276, %279 : vector<16x32xf32>
    %281 = vector.broadcast %260 : vector<1x32xf32> to vector<16x32xf32>
    %282 = arith.addf %280, %281 : vector<16x32xf32>
    %c0_84 = arith.constant 0 : index
    %c0_85 = arith.constant 0 : index
    %283 = vector.load %arg8[%c0_84, %c0_85] : memref<16x32xf32, #tpu.memory_space<vmem>>, vector<16x32xf32>
    tpu.vector_store %arg8[%c0_84, %c0_85], %282 {strides = array<i32>} : memref<16x32xf32, #tpu.memory_space<vmem>>, vector<16x32xf32>,
    return
  }
}

</mosaic_0001>

<bundles_post_ra>
// kernel: tpu_custom_call.1
= control target key start
LH: loop header
LB: loop body
LE: loop exit
PB: predicated region body
PF: predicated region fallthrough
CT: control target
= control target key end

     0   :  { %vm45_vm0 = vcmask 261120   ;;  %s5112_s0 = inlined_call_operand.vmem [shape: f32[16,32], index: 0, kind: input, shape index: {}]   ;;  %s5113_s1 = inlined_call_operand.vmem [shape: f32[2,32,96], index: 1, kind: input, shape index: {}]   ;;  %s5114_s2 = inlined_call_operand.vmem [shape: f32[2,1,96], index: 2, kind: input, shape index: {}]   ;;  %s5115_s3 = inlined_call_operand.vmem [shape: f32[2,96,32], index: 3, kind: input, shape index: {}]   ;;  %s5116_s4 = inlined_call_operand.vmem [shape: f32[2,32,64], index: 4, kind: input, shape index: {}]   ;;  %s5117_s5 = inlined_call_operand.vmem [shape: f32[2,1,64], index: 5, kind: input, shape index: {}]   ;;  %s5118_s6 = inlined_call_operand.vmem [shape: f32[2,6,32], index: 6, kind: input, shape index: {}]   ;;  %s5119_s7 = inlined_call_operand.vmem [shape: f32[2,32], index: 7, kind: input, shape index: {}]   ;;  %s5120_s8 = inlined_call_operand.hbm [shape: f32[16,32], index: 8, kind: output, shape index: {}]  }
   0x1   :  { %v4462_v0 = vld [vmem:[%s5112_s0] sm:$0xff]  ;;  %v4467_v1 = vld [vmem:[%s5112_s0 + $0x8] sm:$0xff] }
   0x2   :  { %13 = vsyncpa [#allocation3], 0  ;;  %v46_v2 = vsel %vm45_vm0, %v4462_v0, 0.0  ;;  %v49_v3 = vsel %vm45_vm0, %v4467_v1, 0.0  ;;  %v103_v14 = vld [vmem:[%s5113_s1 + $0x18] sm:$0xff]  ;;  %v102_v15 = vld [vmem:[%s5113_s1 + $0x10] sm:$0xff]  ;;  %v82_v25 = vlaneseq }
   0x3   :  { %47 = vadd.xlane.f32.xlu0 %v46_v2  ;;  %4000 = vmatprep.subr.mxu1 %v103_v14  ;;  %v101_v16 = vld [vmem:[%s5113_s1 + $0x8] sm:$0xff]  ;;  %v100_v17 = vld [vmem:[%s5113_s1] sm:$0xff]  ;;  %v4402_v50 = vmov 0.0   ;;  %vm4403_vm5 = vmmov 0   ;;  %s4404_s20 = smov 120   ;;  %s4405_s21 = smov 112  }
   0x4   :  { %4001 = vmatpush3.msra.mxu1 %v103_v14  ;;  %v4489_v32 = vshrl.u32 %v82_v25, 7  ;;  %v4495_v37 = vld [vmem:[%s5118_s6] sm:$0x3f]  ;;  %4021 = vmatprep.subr.mxu0 %v4402_v50  ;;  %s4406_s22 = smov 104   ;;  %s4407_s23 = smov 96   ;;  %vm208_vm6 = vcmask 64512  }
   0x5   :  { %4002 = vmatprep.subr.mxu1 %v102_v15  ;;  %v3787_v49 = vld [vmem:[%s5114_s2] ss:$0 sm:$0xff]  ;;  %4023 = vmatprep.mubr.msk.f32.mxu0 %vm4403_vm5, %v4402_v50  ;;  %s4408_s24 = smov 64   ;;  %s4409_s0 = smov 8   ;;  %vm1545_vm7 = vcmask 130048   ;;  %vm1548_vm8 = vcmask 195584  }
   0x6   :  { %4003 = vmatpush3.msra.mxu1 %v102_v15  ;;  %v84_v36 = vsub.s32 2, %v4489_v32  ;;  %v96_v39 = vsub.s32 3, %v4489_v32  ;;  %s4410_s11 = smov 16   ;;  %s4411_s12 = smov 24   ;;  %vm1784_vm13 = vcmask 523264  }
   0x7   :  { %50 = vadd.xlane.f32.xlu0 %v49_v3  ;;  %4004 = vmatprep.subr.mxu1 %v101_v16  ;;  %s4412_s26 = smov [#allocation2]  }
   0x8   :  { %4005 = vmatpush3.msra.mxu1 %v101_v16  ;;  %v85_v38 = vrot.slane %v4495_v37, %v84_v36  ;;  %v97_v41 = vrot.slane %v4495_v37, %v96_v39  ;;  %s3776_s27 = sshll.u32 %s4412_s26, 4  ;;  %s3777_s27 = int_to_ptr.vmem [resolvable:$true] %s3776_s27 }
   0x9   :  { %4006 = vmatprep.subr.mxu1 %v100_v17  ;;  %s4380_s28 = scalar_lea.vmem %s3777_s27, 256  ;;  %p4385_p1 = scmp.lt.s32.totalorder %s3777_s27, %s3777_s27 }
   0xa   :  { %4007 = vmatpush3.msra.mxu1 %v100_v17  ;;  %p4381_p0 = scmp.ne.s32.totalorder %s3777_s27, %s4380_s28  ;;  %p4386_p2 = scmp.lt.s32.totalorder %s4380_s28, %s4380_s28 }
   0xb   :  { %4011 = vmatprep.subr.mxu1 %v4402_v50 }
   0xc   :  { %p4387_p3 = por %p4386_p2, %p4385_p1 }
   0xe   :  { %p4388_p4 = pnand %p4387_p3, %p4381_p0 }
  0x8c   :  { %v48_v4 = vpop.xlane.xlu0 %47 }
  0x8d   :  { %v53_v5 = vmul.f32 0.03125, %v48_v4 }
  0x8f   :  { %v55_v6 = vsub.f32 %v4462_v0, %v53_v5 }
  0x90   :  { %v51_v7 = vpop.xlane.xlu0 %50 }
  0x91   :  { %v54_v8 = vmul.f32 0.03125, %v51_v7  ;;  %v57_v9 = vmul.f32 %v55_v6, %v55_v6  ;;  %v86_v40 = vmul.f32 %v85_v38, %v55_v6 }
  0x93   :  { %v56_v10 = vsub.f32 %v4467_v1, %v54_v8  ;;  %v59_v11 = vsel %vm45_vm0, %v57_v9, 0.0 }
  0x94   :  { %60 = vadd.xlane.f32.xlu1 %v59_v11 }
  0x95   :  { %v58_v12 = vmul.f32 %v56_v10, %v56_v10  ;;  %v87_v44 = vmul.f32 %v85_v38, %v56_v10 }
  0x97   :  { %v62_v13 = vsel %vm45_vm0, %v58_v12, 0.0 }
  0x98   :  { %63 = vadd.xlane.f32.xlu1 %v62_v13 }
 0x11d   :  { %v61_v18 = vpop.xlane.xlu1 %60 }
 0x11e   :  { %v66_v19 = vmul.f32 0.032258064, %v61_v18 }
 0x120   :  { %4276 = vrsqrt.f32 %v66_v19  ;;  %vm70_vm1 = vcmp.eq.f32.partialorder %v66_v19, inf  ;;  %v73_v24 = vand.u32 2147483648, %v66_v19  ;;  %vm72_vm2 = vcmp.eq.f32.partialorder %v66_v19, 0.0 }
 0x121   :  { %v64_v20 = vpop.xlane.xlu1 %63 }
 0x122   :  { %v67_v21 = vmul.f32 0.032258064, %v64_v20 }
 0x124   :  { %4278 = vrsqrt.f32 %v67_v21  ;;  %vm77_vm3 = vcmp.eq.f32.partialorder %v67_v21, inf  ;;  %v80_v31 = vand.u32 2147483648, %v67_v21  ;;  %vm79_vm4 = vcmp.eq.f32.partialorder %v67_v21, 0.0 }
 0x12d   :  { %v4277_v22 = vpop.eup %4276 }
 0x12e   :  { %v69_v23 = vmul.f32 %v4277_v22, %v66_v19 }
 0x130   :  { %v71_v26 = vsel %vm70_vm1, %v66_v19, %v69_v23 }
 0x131   :  { %v4279_v27 = vpop.eup %4278  ;;  %v74_v28 = vsel %vm72_vm2, %v73_v24, %v71_v26 }
 0x132   :  { %v76_v29 = vmul.f32 %v4279_v27, %v67_v21  ;;  %v88_v30 = vadd.f32 1e-06, %v74_v28 }
 0x134   :  { %v78_v33 = vsel %vm77_vm3, %v67_v21, %v76_v29  ;;  %4280 = vrcp.f32 %v88_v30 }
 0x135   :  { %v81_v34 = vsel %vm79_vm4, %v80_v31, %v78_v33 }
 0x136   :  { %v89_v35 = vadd.f32 1e-06, %v81_v34 }
 0x138   :  { %4282 = vrcp.f32 %v89_v35 }
 0x141   :  { %v4281_v42 = vpop.eup %4280 }
 0x142   :  { %v91_v43 = vmul.f32 %v4281_v42, %v86_v40 }
 0x144   :  { %v98_v45 = vadd.f32 %v97_v41, %v91_v43 }
 0x145   :  { %v4283_v46 = vpop.eup %4282 }
 0x146   :  { %v93_v47 = vmul.f32 %v4283_v46, %v87_v44  ;;  %4008 = vmatprep.mubr.msk.f32.mxu1 %vm45_vm0, %v98_v45 }
 0x148   :  { %v99_v48 = vadd.f32 %v97_v41, %v93_v47 }
 0x14a   :  { %4009 = vmatmul.mubr.msk.f32.vlgmr.msra.gmra.mxu1 %vm45_vm0, %v99_v48 }
 0x14b   :  { %4013 = vmatprep.mubr.msk.f32.mxu1 %vm4403_vm5, %v4402_v50 }
 0x20a   :  { %v4010_v51 = vpop.f32.mrf.mxu1 }
 0x20b   :  { %v4511_v52 = vadd.f32 %v4010_v51, %v3787_v49 }
 0x20c   :  { %v183_v53 = vpop.f32.mrf.mxu1 }
 0x20d   :  { %v4517_v54 = vadd.f32 %v3787_v49, %v183_v53  ;;  %196 = vrot.lane.b32.xlu1 %v4511_v52, %s4404_s20 }
 0x20f   :  { %194 = vrot.lane.b32.xlu0 %v4517_v54, %s4404_s20 }
 0x211   :  { %198 = vrot.lane.b32.xlu1 %v4517_v54, %s4405_s21 }
 0x213   :  { %202 = vrot.lane.b32.xlu0 %v4517_v54, %s4406_s22 }
 0x215   :  { %200 = vrot.lane.b32.xlu1 %v4511_v52, %s4405_s21 }
 0x217   :  { %206 = vrot.lane.b32.xlu0 %v4517_v54, %s4407_s23 }
 0x219   :  { %204 = vrot.lane.b32.xlu1 %v4511_v52, %s4406_s22 }
 0x21d   :  { %283 = vrot.lane.b32.xlu1 %v4511_v52, %s4407_s23 }
 0x27f   :  { %v4535_v55 = vpop.permute.xlu1 %196 }
 0x280   :  { %435 = vrot.lane.b32.xlu1 %v4535_v55, %s4407_s23 }
 0x281   :  { %v4539_v56 = vpop.permute.xlu0 %194 }
 0x282   :  { %359 = vrot.lane.b32.xlu0 %v4539_v56, %s4407_s23 }
 0x283   :  { %v4543_v57 = vpop.permute.xlu1 %198 }
 0x285   :  { %v4545_v58 = vpop.permute.xlu0 %202 }
 0x286   :  { %511 = vrot.lane.b32.xlu0 %v4543_v57, %s4407_s23 }
 0x287   :  { %v4549_v59 = vpop.permute.xlu1 %200 }
 0x288   :  { %587 = vrot.lane.b32.xlu1 %v4549_v59, %s4407_s23 }
 0x289   :  { %v207_v60 = vpop.permute.xlu0 %206 }
 0x28a   :  { %663 = vrot.lane.b32.xlu0 %v4545_v58, %s4407_s23  ;;  %4012 = vmatpush3.xpose.msk.msra.mxu1 %vm208_vm6, %v207_v60 }
 0x28b   :  { %v4556_v61 = vpop.permute.xlu1 %204  ;;  %4016 = vmatprep.subr.mxu1 %v4402_v50 }
 0x28c   :  { %739 = vrot.lane.b32.xlu1 %v4556_v61, %s4407_s23 }
 0x28d   :  { %4014 = vmatmul.mubr.msk.f32.vlgmr.msra.gmra.mxu1 %vm208_vm6, %v4517_v54 }
 0x28e   :  { %4018 = vmatprep.mubr.msk.f32.mxu1 %vm4403_vm5, %v4402_v50 }
 0x28f   :  { %v284_v62 = vpop.permute.xlu1 %283 }
 0x290   :  { %4017 = vmatpush3.xpose.msk.msra.mxu1 %vm208_vm6, %v284_v62 }
 0x291   :  { %4026 = vmatprep.subr.mxu1 %v4402_v50 }
 0x293   :  { %4019 = vmatmul.mubr.msk.f32.vlgmr.msra.gmra.mxu1 %vm208_vm6, %v4511_v52 }
 0x294   :  { %4028 = vmatprep.mubr.msk.f32.mxu1 %vm4403_vm5, %v4402_v50 }
 0x2f2   :  { %v436_v63 = vpop.permute.xlu1 %435 }
 0x2f3   :  { %4027 = vmatpush3.xpose.msk.msra.mxu1 %vm208_vm6, %v436_v63 }
 0x2f4   :  { %v360_v2 = vpop.permute.xlu0 %359  ;;  %4036 = vmatprep.subr.mxu1 %v4402_v50 }
 0x2f5   :  { %4022 = vmatpush3.xpose.msk.msra.mxu0 %vm208_vm6, %v360_v2 }
 0x2f6   :  { %4029 = vmatmul.mubr.msk.f32.vlgmr.msra.gmra.mxu1 %vm208_vm6, %v4535_v55  ;;  %4031 = vmatprep.subr.mxu0 %v4402_v50 }
 0x2f7   :  { %4038 = vmatprep.mubr.msk.f32.mxu1 %vm4403_vm5, %v4402_v50 }
 0x2f8   :  { %4024 = vmatmul.mubr.msk.f32.vlgmr.msra.gmra.mxu0 %vm208_vm6, %v4539_v56  ;;  %v512_v3 = vpop.permute.xlu0 %511 }
 0x2f9   :  { %4032 = vmatpush3.xpose.msk.msra.mxu0 %vm208_vm6, %v512_v3  ;;  %4033 = vmatprep.mubr.msk.f32.mxu0 %vm4403_vm5, %v4402_v50 }
 0x2fa   :  { %v588_v4 = vpop.permute.xlu1 %587  ;;  %4041 = vmatprep.subr.mxu0 %v4402_v50 }
 0x2fb   :  { %4037 = vmatpush3.xpose.msk.msra.mxu1 %vm208_vm6, %v588_v4 }
 0x2fc   :  { %4034 = vmatmul.mubr.msk.f32.vlgmr.msra.gmra.mxu0 %vm208_vm6, %v4543_v57  ;;  %v664_v5 = vpop.permute.xlu0 %663  ;;  %4046 = vmatprep.subr.mxu1 %v4402_v50 }
 0x2fd   :  { %4042 = vmatpush3.xpose.msk.msra.mxu0 %vm208_vm6, %v664_v5  ;;  %4043 = vmatprep.mubr.msk.f32.mxu0 %vm4403_vm5, %v4402_v50 }
 0x2fe   :  { %v740_v6 = vpop.permute.xlu1 %739  ;;  %4039 = vmatmul.mubr.msk.f32.vlgmr.msra.gmra.mxu1 %vm208_vm6, %v4549_v59  ;;  %4051 = vmatprep.subr.mxu0 %v4402_v50 }
 0x2ff   :  { %4047 = vmatpush3.xpose.msk.msra.mxu1 %vm208_vm6, %v740_v6  ;;  %4048 = vmatprep.mubr.msk.f32.mxu1 %vm4403_vm5, %v4402_v50 }
 0x300   :  { %4044 = vmatmul.mubr.msk.f32.vlgmr.msra.gmra.mxu0 %vm208_vm6, %v4545_v58  ;;  %4056 = vmatprep.subr.mxu1 %v4402_v50 }
 0x301   :  { %4053 = vmatprep.mubr.msk.f32.mxu0 %vm4403_vm5, %v4402_v50 }
 0x302   :  { %4049 = vmatmul.mubr.msk.f32.vlgmr.msra.gmra.mxu1 %vm208_vm6, %v4556_v61 }
 0x303   :  { %4058 = vmatprep.mubr.msk.f32.mxu1 %vm4403_vm5, %v4402_v50 }
 0x34d   :  { %v279_v7 = vpop.f32.mrf.mxu1 }
 0x34e   :  { %v815_v8 = vmul.f32 0.35355338, %v279_v7 }
 0x34f   :  { %v4015_v9 = vpop.f32.mrf.mxu1 }
 0x350   :  { %v823_v10 = vsel %vm208_vm6, %v815_v8, -inf }
 0x351   :  { %824 = vmax.xlane.f32.xlu0 %v823_v10 }
 0x353   :  { %v355_v11 = vpop.f32.mrf.mxu1 }
 0x354   :  { %v816_v12 = vmul.f32 0.35355338, %v355_v11 }
 0x355   :  { %v4020_v13 = vpop.f32.mrf.mxu1 }
 0x356   :  { %v826_v14 = vsel %vm208_vm6, %v816_v12, -inf }
 0x357   :  { %827 = vmax.xlane.f32.xlu1 %v826_v14 }
 0x3b6   :  { %v507_v15 = vpop.f32.mrf.mxu1 }
 0x3b7   :  { %v818_v16 = vmul.f32 0.35355338, %v507_v15 }
 0x3b8   :  { %v431_v17 = vpop.f32.mrf.mxu0  ;;  %v4030_v18 = vpop.f32.mrf.mxu1 }
 0x3b9   :  { %v817_v19 = vmul.f32 0.35355338, %v431_v17  ;;  %v832_v20 = vsel %vm208_vm6, %v818_v16, -inf }
 0x3ba   :  { %833 = vmax.xlane.f32.xlu0 %v832_v20  ;;  %v4025_v21 = vpop.f32.mrf.mxu0 }
 0x3bb   :  { %v829_v24 = vsel %vm208_vm6, %v817_v19, -inf }
 0x3bc   :  { %v583_v22 = vpop.f32.mrf.mxu0 }
 0x3bd   :  { %v819_v23 = vmul.f32 0.35355338, %v583_v22 }
 0x3be   :  { %v659_v25 = vpop.f32.mrf.mxu1  ;;  %830 = vmax.xlane.f32.xlu0 %v829_v24  ;;  %v4035_v26 = vpop.f32.mrf.mxu0 }
 0x3bf   :  { %v820_v27 = vmul.f32 0.35355338, %v659_v25  ;;  %v835_v33 = vsel %vm208_vm6, %v819_v23, -inf }
 0x3c0   :  { %v4040_v28 = vpop.f32.mrf.mxu1  ;;  %v735_v29 = vpop.f32.mrf.mxu0 }
 0x3c1   :  { %v821_v30 = vmul.f32 0.35355338, %v735_v29  ;;  %v838_v31 = vsel %vm208_vm6, %v820_v27, -inf }
 0x3c2   :  { %839 = vmax.xlane.f32.xlu1 %v838_v31  ;;  %v811_v34 = vpop.f32.mrf.mxu1  ;;  %836 = vmax.xlane.f32.xlu0 %v835_v33  ;;  %v4045_v35 = vpop.f32.mrf.mxu0 }
 0x3c3   :  { %v822_v38 = vmul.f32 0.35355338, %v811_v34  ;;  %v841_v42 = vsel %vm208_vm6, %v821_v30, -inf }
 0x3c4   :  { %v4050_v40 = vpop.f32.mrf.mxu1 }
 0x3c5   :  { %v844_v41 = vsel %vm208_vm6, %v822_v38, -inf }
 0x3c6   :  { %845 = vmax.xlane.f32.xlu1 %v844_v41  ;;  %842 = vmax.xlane.f32.xlu0 %v841_v42 }
 0x3d7   :  { %987 = vrot.lane.b32.xlu1 %v4511_v52, %s4408_s24 }
 0x3da   :  { %v825_v43 = vpop.xlane.xlu0 %824 }
 0x3db   :  { %1063 = vrot.lane.b32.xlu1 %v4539_v56, %s4408_s24  ;;  %v847_v44 = vsub.f32 %v815_v8, %v825_v43 }
 0x3dc   :  { %911 = vrot.lane.b32.xlu0 %v4517_v54, %s4408_s24 }
 0x3dd   :  { %v855_v45 = vmul.f32 1.442695, %v847_v44 }
 0x3df   :  { %1139 = vrot.lane.b32.xlu1 %v4535_v55, %s4408_s24  ;;  %4284 = vpow2.f32 %v855_v45 }
 0x3e0   :  { %1215 = vrot.lane.b32.xlu0 %v4543_v57, %s4408_s24  ;;  %v828_v46 = vpop.xlane.xlu1 %827 }
 0x3e1   :  { %v848_v47 = vsub.f32 %v816_v12, %v828_v46 }
 0x3e3   :  { %1291 = vrot.lane.b32.xlu1 %v4549_v59, %s4408_s24  ;;  %v857_v48 = vmul.f32 1.442695, %v848_v47 }
 0x3e5   :  { %4286 = vpow2.f32 %v857_v48 }
 0x3ec   :  { %v4627_v49 = vpop.eup %4284 }
 0x3ed   :  { %v871_v51 = vsel %vm208_vm6, %v4627_v49, 0.0 }
 0x3f2   :  { %v4631_v52 = vpop.eup %4286 }
 0x3f3   :  { %v874_v53 = vsel %vm208_vm6, %v4631_v52, 0.0 }
 0x3ff   :  { %872 = vadd.xlane.f32.xlu0 %v871_v51 }
 0x407   :  { %875 = vadd.xlane.f32.xlu1 %v874_v53 }
 0x443   :  { %v834_v54 = vpop.xlane.xlu0 %833 }
 0x444   :  { %v850_v55 = vsub.f32 %v818_v16, %v834_v54 }
 0x446   :  { %v861_v56 = vmul.f32 1.442695, %v850_v55 }
 0x447   :  { %v831_v57 = vpop.xlane.xlu0 %830 }
 0x448   :  { %4288 = vpow2.f32 %v861_v56  ;;  %v849_v59 = vsub.f32 %v817_v19, %v831_v57 }
 0x44a   :  { %v859_v60 = vmul.f32 1.442695, %v849_v59 }
 0x44b   :  { %v840_v62 = vpop.xlane.xlu1 %839  ;;  %v837_v63 = vpop.xlane.xlu0 %836 }
 0x44c   :  { %4290 = vpow2.f32 %v859_v60  ;;  %v852_v2 = vsub.f32 %v820_v27, %v840_v62  ;;  %v851_v3 = vsub.f32 %v819_v23, %v837_v63 }
 0x44e   :  { %v865_v4 = vmul.f32 1.442695, %v852_v2  ;;  %v863_v5 = vmul.f32 1.442695, %v851_v3  ;;  %v36_v3 = vld [vmem:[%s5115_s3 + $0x18] sm:$0xff] }
 0x44f   :  { %v846_v6 = vpop.xlane.xlu1 %845  ;;  %v843_v7 = vpop.xlane.xlu0 %842 }
 0x450   :  { %4292 = vpow2.f32 %v865_v4  ;;  %v854_v8 = vsub.f32 %v822_v38, %v846_v6  ;;  %v853_v9 = vsub.f32 %v821_v30, %v843_v7  ;;  %v35_v4 = vld [vmem:[%s5115_s3 + $0x10] sm:$0xff]  ;;  %v33_v7 = vld [vmem:[%s5115_s3] sm:$0xff] }
 0x451   :  { %4294 = vpow2.f32 %v863_v5  ;;  %v34_v5 = vld [vmem:[%s5115_s3 + $0x8] sm:$0xff] }
 0x452   :  { %v869_v10 = vmul.f32 1.442695, %v854_v8  ;;  %v867_v11 = vmul.f32 1.442695, %v853_v9 }
 0x453   :  { %v988_v12 = vpop.permute.xlu1 %987  ;;  %v912_v13 = vpop.permute.xlu0 %911 }
 0x454   :  { %4296 = vpow2.f32 %v869_v10  ;;  %4052 = vmatpush3.msra.mxu0 %v912_v13  ;;  %4057 = vmatpush3.msra.mxu1 %v988_v12 }
 0x455   :  { %v4289_v14 = vpop.eup %4288  ;;  %4298 = vpow2.f32 %v867_v11  ;;  %4061 = vmatprep.subr.mxu0 %v4402_v50  ;;  %4066 = vmatprep.subr.mxu1 %v4402_v50 }
 0x456   :  { %v880_v15 = vsel %vm208_vm6, %v4289_v14, 0.0 }
 0x457   :  { %881 = vadd.xlane.f32.xlu1 %v880_v15  ;;  %v1064_v26 = vpop.permute.xlu1 %1063  ;;  %v1216_v27 = vpop.permute.xlu0 %1215 }
 0x459   :  { %v4291_v16 = vpop.eup %4290 }
 0x45a   :  { %v877_v17 = vsel %vm208_vm6, %v4291_v16, 0.0 }
 0x45b   :  { %878 = vadd.xlane.f32.xlu0 %v877_v17  ;;  %v1140_v28 = vpop.permute.xlu1 %1139 }
 0x45d   :  { %v4293_v18 = vpop.eup %4292 }
 0x45e   :  { %v4295_v19 = vpop.eup %4294  ;;  %v886_v20 = vsel %vm208_vm6, %v4293_v18, 0.0 }
 0x45f   :  { %887 = vadd.xlane.f32.xlu1 %v886_v20  ;;  %v883_v21 = vsel %vm208_vm6, %v4295_v19, 0.0  ;;  %v1292_v30 = vpop.permute.xlu1 %1291 }
 0x460   :  { %884 = vadd.xlane.f32.xlu0 %v883_v21 }
 0x461   :  { %v4641_v22 = vpop.eup %4296 }
 0x462   :  { %v4643_v23 = vpop.eup %4298  ;;  %v892_v24 = vsel %vm208_vm6, %v4641_v22, 0.0 }
 0x463   :  { %893 = vadd.xlane.f32.xlu1 %v892_v24  ;;  %v889_v25 = vsel %vm208_vm6, %v4643_v23, 0.0 }
 0x464   :  { %890 = vadd.xlane.f32.xlu0 %v889_v25 }
 0x474   :  { %1443 = vrot.lane.b32.xlu1 %v4556_v61, %s4408_s24 }
 0x47a   :  { %1367 = vrot.lane.b32.xlu0 %v4545_v58, %s4408_s24 }
 0x488   :  { %v873_v29 = vpop.xlane.xlu0 %872 }
 0x489   :  { %4300 = vrcp.f32 %v873_v29 }
 0x490   :  { %v876_v31 = vpop.xlane.xlu1 %875 }
 0x491   :  { %4302 = vrcp.f32 %v876_v31  ;;  %v1553_v31 = vsub.s32 0, %v4489_v32 }
 0x496   :  { %v4301_v33 = vpop.eup %4300 }
 0x497   :  { %v896_v34 = vmul.f32 %v4301_v33, %v4627_v49  ;;  %v1554_v33 = vrot.slane %v4495_v37, %v1553_v31 }
 0x499   :  { %4054 = vmatmul.mubr.msk.f32.vlgmr.msra.gmra.mxu0 %vm208_vm6, %v896_v34 }
 0x49a   :  { %4062 = vmatpush3.msra.mxu0 %v1064_v26  ;;  %4063 = vmatprep.mubr.msk.f32.mxu0 %vm4403_vm5, %v4402_v50 }
 0x49b   :  { %4071 = vmatprep.subr.mxu0 %v4402_v50 }
 0x49e   :  { %v4303_v58 = vpop.eup %4302 }
 0x49f   :  { %v898_v61 = vmul.f32 %v4303_v58, %v4631_v52 }
 0x4a1   :  { %4059 = vmatmul.mubr.msk.f32.vlgmr.msra.gmra.mxu1 %vm208_vm6, %v898_v61 }
 0x4a2   :  { %4067 = vmatpush3.msra.mxu1 %v1140_v28  ;;  %4068 = vmatprep.mubr.msk.f32.mxu1 %vm4403_vm5, %v4402_v50 }
 0x4a3   :  { %4076 = vmatprep.subr.mxu1 %v4402_v50 }
 0x4e0   :  { %v882_v35 = vpop.xlane.xlu1 %881 }
 0x4e1   :  { %4304 = vrcp.f32 %v882_v35 }
 0x4e4   :  { %v879_v38 = vpop.xlane.xlu0 %878 }
 0x4e5   :  { %4306 = vrcp.f32 %v879_v38 }
 0x4e8   :  { %v888_v40 = vpop.xlane.xlu1 %887 }
 0x4e9   :  { %4308 = vrcp.f32 %v888_v40  ;;  %v885_v41 = vpop.xlane.xlu0 %884 }
 0x4ea   :  { %4310 = vrcp.f32 %v885_v41 }
 0x4ec   :  { %v894_v42 = vpop.xlane.xlu1 %893 }
 0x4ed   :  { %4312 = vrcp.f32 %v894_v42  ;;  %v891_v43 = vpop.xlane.xlu0 %890 }
 0x4ee   :  { %v4305_v44 = vpop.eup %4304  ;;  %4314 = vrcp.f32 %v891_v43 }
 0x4ef   :  { %v902_v45 = vmul.f32 %v4305_v44, %v4289_v14 }
 0x4f0   :  { %v1444_v53 = vpop.permute.xlu1 %1443 }
 0x4f1   :  { %4069 = vmatmul.mubr.msk.f32.vlgmr.msra.gmra.mxu1 %vm208_vm6, %v902_v45  ;;  %v1368_v55 = vpop.permute.xlu0 %1367 }
 0x4f2   :  { %v4307_v46 = vpop.eup %4306  ;;  %4077 = vmatpush3.msra.mxu1 %v1292_v30  ;;  %4078 = vmatprep.mubr.msk.f32.mxu1 %vm4403_vm5, %v4402_v50 }
 0x4f3   :  { %v900_v47 = vmul.f32 %v4307_v46, %v4291_v16  ;;  %4086 = vmatprep.subr.mxu1 %v4402_v50 }
 0x4f5   :  { %4064 = vmatmul.mubr.msk.f32.vlgmr.msra.gmra.mxu0 %vm208_vm6, %v900_v47 }
 0x4f6   :  { %v4309_v48 = vpop.eup %4308  ;;  %4072 = vmatpush3.msra.mxu0 %v1216_v27  ;;  %4073 = vmatprep.mubr.msk.f32.mxu0 %vm4403_vm5, %v4402_v50 }
 0x4f7   :  { %v4311_v49 = vpop.eup %4310  ;;  %4081 = vmatprep.subr.mxu0 %v4402_v50  ;;  %v906_v51 = vmul.f32 %v4309_v48, %v4293_v18 }
 0x4f8   :  { %v904_v52 = vmul.f32 %v4311_v49, %v4295_v19 }
 0x4f9   :  { %4079 = vmatmul.mubr.msk.f32.vlgmr.msra.gmra.mxu1 %vm208_vm6, %v906_v51 }
 0x4fa   :  { %v4313_v54 = vpop.eup %4312  ;;  %4074 = vmatmul.mubr.msk.f32.vlgmr.msra.gmra.mxu0 %vm208_vm6, %v904_v52  ;;  %4087 = vmatpush3.msra.mxu1 %v1444_v53  ;;  %v1693_v52 = vld [vmem:[%s5116_s4 + $0x18] sm:$0xff]  ;;  %v1692_v53 = vld [vmem:[%s5116_s4 + $0x10] sm:$0xff] }
 0x4fb   :  { %v4315_v56 = vpop.eup %4314  ;;  %4082 = vmatpush3.msra.mxu0 %v1368_v55  ;;  %4083 = vmatprep.mubr.msk.f32.mxu0 %vm4403_vm5, %v4402_v50  ;;  %v910_v57 = vmul.f32 %v4313_v54, %v4641_v22  ;;  %v1691_v54 = vld [vmem:[%s5116_s4 + $0x8] sm:$0xff]  ;;  %v1690_v55 = vld [vmem:[%s5116_s4] sm:$0xff] }
 0x4fc   :  { %4088 = vmatprep.mubr.msk.f32.mxu1 %vm4403_vm5, %v4402_v50  ;;  %v908_v59 = vmul.f32 %v4315_v56, %v4643_v23  ;;  %4091 = vmatprep.subr.mxu0 %v36_v3  ;;  %v44_v56 = vld [vmem:[%s5115_s3 + $0x58] sm:$0xff] }
 0x4fd   :  { %4089 = vmatmul.mubr.msk.f32.vlgmr.msra.gmra.mxu1 %vm208_vm6, %v910_v57  ;;  %4102 = vmatprep.subr.mxu1 %v1693_v52  ;;  %v43_v57 = vld [vmem:[%s5115_s3 + $0x50] sm:$0xff] }
 0x4fe   :  { %4084 = vmatmul.mubr.msk.f32.vlgmr.msra.gmra.mxu0 %vm208_vm6, %v908_v59  ;;  %4103 = vmatpush3.msra.mxu1 %v1693_v52  ;;  %v42_v59 = vld [vmem:[%s5115_s3 + $0x48] sm:$0xff] }
 0x4ff   :  { %4092 = vmatpush3.msra.mxu0 %v36_v3  ;;  %4104 = vmatprep.subr.mxu1 %v1692_v53 }
 0x500   :  { %4093 = vmatprep.subr.mxu0 %v35_v4  ;;  %4105 = vmatpush3.msra.mxu1 %v1692_v53 }
 0x501   :  { %4094 = vmatpush3.msra.mxu0 %v35_v4  ;;  %4106 = vmatprep.subr.mxu1 %v1691_v54 }
 0x502   :  { %4095 = vmatprep.subr.mxu0 %v34_v5  ;;  %4107 = vmatpush3.msra.mxu1 %v1691_v54 }
 0x503   :  { %4096 = vmatpush3.msra.mxu0 %v34_v5  ;;  %4108 = vmatprep.subr.mxu1 %v1690_v55 }
 0x504   :  { %4097 = vmatprep.subr.mxu0 %v33_v7  ;;  %4109 = vmatpush3.msra.mxu1 %v1690_v55 }
 0x505   :  { %4098 = vmatpush3.msra.mxu0 %v33_v7 }
 0x506   :  { %4113 = vmatprep.subr.mxu0 %v44_v56 }
 0x559   :  { %v983_v60 = vpop.f32.mrf.mxu0 }
 0x55b   :  { %v4055_v62 = vpop.f32.mrf.mxu0 }
 0x561   :  { %v1059_v63 = vpop.f32.mrf.mxu1 }
 0x563   :  { %v4060_v2 = vpop.f32.mrf.mxu1 }
 0x5b1   :  { %v1211_v6 = vpop.f32.mrf.mxu1 }
 0x5b2   :  { %1523 = vrot.lane.b32.xlu1 %v1211_v6, %s4409_s0 }
 0x5b3   :  { %v4070_v8 = vpop.f32.mrf.mxu1 }
 0x5b5   :  { %v1135_v9 = vpop.f32.mrf.mxu0 }
 0x5b6   :  { %1521 = vrot.lane.b32.xlu0 %v1135_v9, %s4409_s0 }
 0x5b7   :  { %v4065_v10 = vpop.f32.mrf.mxu0 }
 0x5b9   :  { %v1363_v11 = vpop.f32.mrf.mxu1 }
 0x5ba   :  { %v1287_v12 = vpop.f32.mrf.mxu0  ;;  %1531 = vrot.lane.b32.xlu1 %v1363_v11, %s4410_s11 }
 0x5bb   :  { %1529 = vrot.lane.b32.xlu0 %v1287_v12, %s4410_s11  ;;  %v4080_v13 = vpop.f32.mrf.mxu1 }
 0x5bc   :  { %v4075_v14 = vpop.f32.mrf.mxu0 }
 0x5bd   :  { %v1515_v15 = vpop.f32.mrf.mxu1 }
 0x5be   :  { %v1439_v16 = vpop.f32.mrf.mxu0  ;;  %1539 = vrot.lane.b32.xlu1 %v1515_v15, %s4411_s12 }
 0x5bf   :  { %1537 = vrot.lane.b32.xlu0 %v1439_v16, %s4411_s12  ;;  %v4090_v17 = vpop.f32.mrf.mxu1  ;;  %v1674_v16 = vsub.s32 4, %v4489_v32 }
 0x5c0   :  { %v4085_v18 = vpop.f32.mrf.mxu0  ;;  %v1686_v17 = vsub.s32 5, %v4489_v32 }
 0x5c1   :  { %v1675_v18 = vrot.slane %v4495_v37, %v1674_v16 }
 0x624   :  { %v1524_v19 = vpop.permute.xlu1 %1523 }
 0x625   :  { %v1544_v23 = vsel %vm208_vm6, %v1059_v63, %v1524_v19 }
 0x628   :  { %v1522_v20 = vpop.permute.xlu0 %1521 }
 0x629   :  { %v1543_v24 = vsel %vm208_vm6, %v983_v60, %v1522_v20  ;;  %v41_v60 = vld [vmem:[%s5115_s3 + $0x40] sm:$0xff]  ;;  %v1687_v20 = vrot.slane %v4495_v37, %v1686_v17 }
 0x62c   :  { %v1532_v21 = vpop.permute.xlu1 %1531 }
 0x62d   :  { %v1530_v22 = vpop.permute.xlu0 %1529  ;;  %v1547_v25 = vsel %vm1545_vm7, %v1544_v23, %v1532_v21 }
 0x62e   :  { %v1546_v27 = vsel %vm1545_vm7, %v1543_v24, %v1530_v22 }
 0x630   :  { %v1540_v26 = vpop.permute.xlu1 %1539 }
 0x631   :  { %v1550_v28 = vsel %vm1548_vm8, %v1547_v25, %v1540_v26  ;;  %v1538_v29 = vpop.permute.xlu0 %1537 }
 0x632   :  { %v1549_v30 = vsel %vm1548_vm8, %v1546_v27, %v1538_v29  ;;  %v39_v29 = vld [vmem:[%s5115_s3 + $0x30] sm:$0xff] }
 0x633   :  { %4099 = vmatprep.mubr.msk.f32.mxu0 %vm45_vm0, %v1549_v30  ;;  %v38_v30 = vld [vmem:[%s5115_s3 + $0x28] sm:$0xff] }
 0x634   :  { %4100 = vmatmul.mubr.msk.f32.vlgmr.msra.gmra.mxu0 %vm45_vm0, %v1550_v28  ;;  %v40_v28 = vld [vmem:[%s5115_s3 + $0x38] sm:$0xff] }
 0x635   :  { %4114 = vmatpush3.msra.mxu0 %v44_v56 }
 0x636   :  { %4115 = vmatprep.subr.mxu0 %v43_v57 }
 0x637   :  { %4116 = vmatpush3.msra.mxu0 %v43_v57 }
 0x638   :  { %4117 = vmatprep.subr.mxu0 %v42_v59 }
 0x639   :  { %4118 = vmatpush3.msra.mxu0 %v42_v59 }
 0x63a   :  { %4119 = vmatprep.subr.mxu0 %v41_v60 }
 0x63b   :  { %4120 = vmatpush3.msra.mxu0 %v41_v60 }
 0x63c   :  { %4121 = vmatprep.subr.mxu0 %v40_v28 }
 0x63d   :  { %4122 = vmatpush3.msra.mxu0 %v40_v28 }
 0x63e   :  { %4123 = vmatprep.subr.mxu0 %v39_v29 }
 0x63f   :  { %4124 = vmatpush3.msra.mxu0 %v39_v29 }
 0x640   :  { %4125 = vmatprep.subr.mxu0 %v38_v30 }
 0x641   :  { %4126 = vmatpush3.msra.mxu0 %v38_v30 }
 0x6f4   :  { %v4101_v34 = vpop.f32.mrf.mxu0 }
 0x6f5   :  { %v1633_v58 = vadd.f32 %v4101_v34, %v1554_v33  ;;  %v3816_v34 = vld [vmem:[%s5117_s5] ss:$0 sm:$0xff] }
 0x6f6   :  { %v1627_v61 = vpop.f32.mrf.mxu0 }
 0x6f7   :  { %v4712_v35 = vadd.f32 %v1633_v58, %v4467_v1  ;;  %v1628_v38 = vadd.f32 %v1627_v61, %v1554_v33  ;;  %v37_v33 = vld [vmem:[%s5115_s3 + $0x20] sm:$0xff] }
 0x6f8   :  { %4127 = vmatprep.subr.mxu0 %v37_v33 }
 0x6f9   :  { %v4715_v40 = vadd.f32 %v1628_v38, %v4462_v0  ;;  %v1641_v41 = vsel %vm45_vm0, %v4712_v35, 0.0  ;;  %4128 = vmatpush3.msra.mxu0 %v37_v33 }
 0x6fa   :  { %1642 = vadd.xlane.f32.xlu1 %v1641_v41  ;;  %4153 = vmatprep.subr.mxu0 %v4402_v50 }
 0x6fb   :  { %v1638_v42 = vsel %vm45_vm0, %v4715_v40, 0.0 }
 0x6fc   :  { %1639 = vadd.xlane.f32.xlu0 %v1638_v42 }
 0x783   :  { %v1643_v43 = vpop.xlane.xlu1 %1642 }
 0x784   :  { %v1645_v44 = vmul.f32 0.03125, %v1643_v43 }
 0x785   :  { %v1640_v45 = vpop.xlane.xlu0 %1639 }
 0x786   :  { %v1644_v46 = vmul.f32 0.03125, %v1640_v45  ;;  %v4722_v47 = vsub.f32 %v4712_v35, %v1645_v44  ;;  %v1870_v44 = vsub.s32 1, %v4489_v32 }
 0x788   :  { %v1646_v1 = vsub.f32 %v4715_v40, %v1644_v46  ;;  %v1649_v49 = vmul.f32 %v4722_v47, %v4722_v47  ;;  %v1677_v23 = vmul.f32 %v1675_v18, %v4722_v47  ;;  %v1871_v45 = vrot.slane %v4495_v37, %v1870_v44 }
 0x78a   :  { %v1648_v48 = vmul.f32 %v1646_v1, %v1646_v1  ;;  %v1653_v51 = vsel %vm45_vm0, %v1649_v49, 0.0  ;;  %v1676_v19 = vmul.f32 %v1675_v18, %v1646_v1 }
 0x78c   :  { %v1650_v0 = vsel %vm45_vm0, %v1648_v48, 0.0 }
 0x78d   :  { %1651 = vadd.xlane.f32.xlu0 %v1650_v0 }
 0x791   :  { %1654 = vadd.xlane.f32.xlu0 %v1653_v51 }
 0x816   :  { %v1652_v62 = vpop.xlane.xlu0 %1651 }
 0x817   :  { %v1656_v63 = vmul.f32 0.032258064, %v1652_v62  ;;  %v3837_v62 = vld [vmem:[%s5113_s1 + $0x38] sm:$0xff] }
 0x818   :  { %4132 = vmatprep.subr.mxu1 %v3837_v62 }
 0x819   :  { %4316 = vrsqrt.f32 %v1656_v63  ;;  %vm1660_vm9 = vcmp.eq.f32.partialorder %v1656_v63, inf  ;;  %v1663_v6 = vand.u32 2147483648, %v1656_v63  ;;  %vm1662_vm10 = vcmp.eq.f32.partialorder %v1656_v63, 0.0 }
 0x81a   :  { %v1655_v2 = vpop.xlane.xlu0 %1654 }
 0x81b   :  { %v1657_v3 = vmul.f32 0.032258064, %v1655_v2  ;;  %v3835_v2 = vld [vmem:[%s5113_s1 + $0x28] sm:$0xff] }
 0x81d   :  { %4318 = vrsqrt.f32 %v1657_v3  ;;  %vm1667_vm11 = vcmp.eq.f32.partialorder %v1657_v3, inf  ;;  %v1670_v12 = vand.u32 2147483648, %v1657_v3  ;;  %vm1669_vm12 = vcmp.eq.f32.partialorder %v1657_v3, 0.0 }
 0x826   :  { %v4317_v4 = vpop.eup %4316 }
 0x827   :  { %v1659_v5 = vmul.f32 %v4317_v4, %v1656_v63 }
 0x829   :  { %v1661_v7 = vsel %vm1660_vm9, %v1656_v63, %v1659_v5  ;;  %v3836_v63 = vld [vmem:[%s5113_s1 + $0x30] sm:$0xff] }
 0x82a   :  { %v4319_v8 = vpop.eup %4318  ;;  %v1664_v9 = vsel %vm1662_vm10, %v1663_v6, %v1661_v7 }
 0x82b   :  { %v1678_v10 = vadd.f32 1e-06, %v1664_v9  ;;  %v1666_v11 = vmul.f32 %v4319_v8, %v1657_v3 }
 0x82d   :  { %4320 = vrcp.f32 %v1678_v10  ;;  %v1668_v13 = vsel %vm1667_vm11, %v1657_v3, %v1666_v11  ;;  %v3834_v3 = vld [vmem:[%s5113_s1 + $0x20] sm:$0xff] }
 0x82e   :  { %v1671_v14 = vsel %vm1669_vm12, %v1670_v12, %v1668_v13 }
 0x82f   :  { %v1679_v15 = vadd.f32 1e-06, %v1671_v14 }
 0x831   :  { %4322 = vrcp.f32 %v1679_v15 }
 0x83a   :  { %v4321_v21 = vpop.eup %4320 }
 0x83b   :  { %v1681_v22 = vmul.f32 %v4321_v21, %v1676_v19 }
 0x83d   :  { %v1688_v24 = vadd.f32 %v1687_v20, %v1681_v22  ;;  %v4818_v22 = vld [vmem:[%s5118_s6 + $0x8] sm:$0x3f] }
 0x83e   :  { %v4323_v25 = vpop.eup %4322 }
 0x83f   :  { %v1683_v26 = vmul.f32 %v4323_v25, %v1677_v23  ;;  %4110 = vmatprep.mubr.msk.f32.mxu1 %vm45_vm0, %v1688_v24  ;;  %v1926_v23 = vrot.slane %v4818_v22, %v84_v36  ;;  %v1938_v24 = vrot.slane %v4818_v22, %v96_v39  ;;  %v3839_v36 = vld [vmem:[%s5114_s2 + $0x1] ss:$0 sm:$0xff] }
 0x841   :  { %v1689_v27 = vadd.f32 %v1687_v20, %v1683_v26 }
 0x843   :  { %4111 = vmatmul.mubr.msk.f32.vlgmr.msra.gmra.mxu1 %vm45_vm0, %v1689_v27 }
 0x844   :  { %4133 = vmatpush3.msra.mxu1 %v3837_v62 }
 0x845   :  { %4134 = vmatprep.subr.mxu1 %v3836_v63 }
 0x846   :  { %4135 = vmatpush3.msra.mxu1 %v3836_v63 }
 0x847   :  { %4136 = vmatprep.subr.mxu1 %v3835_v2 }
 0x848   :  { %4137 = vmatpush3.msra.mxu1 %v3835_v2 }
 0x849   :  { %4138 = vmatprep.subr.mxu1 %v3834_v3 }
 0x84a   :  { %4139 = vmatpush3.msra.mxu1 %v3834_v3 }
 0x84b   :  { %4143 = vmatprep.subr.mxu1 %v4402_v50 }
 0x903   :  { %v4112_v58 = vpop.f32.mrf.mxu1 }
 0x904   :  { %v1779_v61 = vadd.f32 %v4112_v58, %v3816_v34 }
 0x905   :  { %v1773_v38 = vpop.f32.mrf.mxu1 }
 0x906   :  { %v1774_v41 = vadd.f32 %v3816_v34, %v1773_v38  ;;  %v1783_v43 = vmax.f32 %v1779_v61, 0.0 }
 0x908   :  { %v1782_v42 = vmax.f32 %v1774_v41, 0.0 }
 0x90a   :  { %4129 = vmatprep.mubr.msk.f32.mxu0 %vm1784_vm13, %v1782_v42 }
 0x90b   :  { %4130 = vmatmul.mubr.msk.f32.vlgmr.msra.gmra.mxu0 %vm1784_vm13, %v1783_v43 }
 0x90c   :  { %4155 = vmatprep.mubr.msk.f32.mxu0 %vm4403_vm5, %v4402_v50 }
 0x9cb   :  { %v4131_v46 = vpop.f32.mrf.mxu0 }
 0x9cc   :  { %v1867_v47 = vadd.f32 %v4131_v46, %v4712_v35 }
 0x9cd   :  { %v1857_v1 = vpop.f32.mrf.mxu0 }
 0x9ce   :  { %v4789_v48 = vadd.f32 %v1871_v45, %v1867_v47  ;;  %v1866_v0 = vadd.f32 %v1857_v1, %v4715_v40 }
 0x9d0   :  { %v4792_v49 = vadd.f32 %v1871_v45, %v1866_v0  ;;  %v1892_v51 = vsel %vm45_vm0, %v4789_v48, 0.0 }
 0x9d1   :  { %1893 = vadd.xlane.f32.xlu1 %v1892_v51 }
 0x9d2   :  { %v1889_v52 = vsel %vm45_vm0, %v4792_v49, 0.0 }
 0x9d3   :  { %1890 = vadd.xlane.f32.xlu0 %v1889_v52 }
 0xa5a   :  { %v1894_v53 = vpop.xlane.xlu1 %1893 }
 0xa5b   :  { %v1896_v37 = vmul.f32 0.03125, %v1894_v53 }
 0xa5c   :  { %v1891_v54 = vpop.xlane.xlu0 %1890 }
 0xa5d   :  { %v1898_v35 = vsub.f32 %v4789_v48, %v1896_v37  ;;  %v1895_v55 = vmul.f32 0.03125, %v1891_v54 }
 0xa5f   :  { %v1897_v56 = vsub.f32 %v4792_v49, %v1895_v55  ;;  %v1900_v57 = vmul.f32 %v1898_v35, %v1898_v35  ;;  %v1928_v25 = vmul.f32 %v1926_v23, %v1898_v35 }
 0xa61   :  { %v1904_v40 = vsel %vm45_vm0, %v1900_v57, 0.0  ;;  %v1899_v59 = vmul.f32 %v1897_v56, %v1897_v56  ;;  %v1927_v28 = vmul.f32 %v1926_v23, %v1897_v56 }
 0xa62   :  { %1905 = vadd.xlane.f32.xlu1 %v1904_v40 }
 0xa63   :  { %v1901_v60 = vsel %vm45_vm0, %v1899_v59, 0.0 }
 0xa64   :  { %1902 = vadd.xlane.f32.xlu0 %v1901_v60 }
 0xaeb   :  { %v1906_v4 = vpop.xlane.xlu1 %1905 }
 0xaec   :  { %v1908_v5 = vmul.f32 0.032258064, %v1906_v4 }
 0xaed   :  { %v1903_v6 = vpop.xlane.xlu0 %1902 }
 0xaee   :  { %4324 = vrsqrt.f32 %v1908_v5  ;;  %v1907_v7 = vmul.f32 0.032258064, %v1903_v6  ;;  %vm1918_vm14 = vcmp.eq.f32.partialorder %v1908_v5, inf  ;;  %v1921_v10 = vand.u32 2147483648, %v1908_v5 }
 0xaef   :  { %vm1920_vm15 = vcmp.eq.f32.partialorder %v1908_v5, 0.0 }
 0xaf0   :  { %4326 = vrsqrt.f32 %v1907_v7  ;;  %vm1911_vm1 = vcmp.eq.f32.partialorder %v1907_v7, inf  ;;  %v1914_v18 = vand.u32 2147483648, %v1907_v7  ;;  %vm1913_vm2 = vcmp.eq.f32.partialorder %v1907_v7, 0.0 }
 0xafb   :  { %v4325_v8 = vpop.eup %4324 }
 0xafc   :  { %v1917_v9 = vmul.f32 %v4325_v8, %v1908_v5 }
 0xafd   :  { %v4327_v11 = vpop.eup %4326 }
 0xafe   :  { %v1919_v12 = vsel %vm1918_vm14, %v1908_v5, %v1917_v9  ;;  %v1910_v14 = vmul.f32 %v4327_v11, %v1907_v7 }
 0xaff   :  { %v1922_v13 = vsel %vm1920_vm15, %v1921_v10, %v1919_v12 }
 0xb00   :  { %v1930_v15 = vadd.f32 1e-06, %v1922_v13  ;;  %v1912_v19 = vsel %vm1911_vm1, %v1907_v7, %v1910_v14 }
 0xb01   :  { %v1915_v20 = vsel %vm1913_vm2, %v1914_v18, %v1912_v19 }
 0xb02   :  { %4328 = vrcp.f32 %v1930_v15  ;;  %v1929_v21 = vadd.f32 1e-06, %v1915_v20 }
 0xb04   :  { %4330 = vrcp.f32 %v1929_v21 }
 0xb0f   :  { %v4329_v26 = vpop.eup %4328 }
 0xb10   :  { %v1934_v27 = vmul.f32 %v4329_v26, %v1928_v25 }
 0xb11   :  { %v4331_v29 = vpop.eup %4330 }
 0xb12   :  { %v1940_v30 = vadd.f32 %v1938_v24, %v1934_v27  ;;  %v1932_v33 = vmul.f32 %v4331_v29, %v1927_v28 }
 0xb14   :  { %v1939_v34 = vadd.f32 %v1938_v24, %v1932_v33 }
 0xb16   :  { %4140 = vmatprep.mubr.msk.f32.mxu1 %vm45_vm0, %v1939_v34 }
 0xb17   :  { %4141 = vmatmul.mubr.msk.f32.vlgmr.msra.gmra.mxu1 %vm45_vm0, %v1940_v30 }
 0xb18   :  { %4145 = vmatprep.mubr.msk.f32.mxu1 %vm4403_vm5, %v4402_v50 }
 0xbd7   :  { %v4142_v39 = vpop.f32.mrf.mxu1 }
 0xbd8   :  { %v4833_v58 = vadd.f32 %v4142_v39, %v3839_v36 }
 0xbd9   :  { %v2026_v61 = vpop.f32.mrf.mxu1 }
 0xbda   :  { %v4835_v38 = vadd.f32 %v3839_v36, %v2026_v61  ;;  %2039 = vrot.lane.b32.xlu1 %v4833_v58, %s4404_s20 }
 0xbdc   :  { %2037 = vrot.lane.b32.xlu0 %v4835_v38, %s4404_s20 }
 0xbde   :  { %2041 = vrot.lane.b32.xlu1 %v4835_v38, %s4405_s21 }
 0xbe0   :  { %2045 = vrot.lane.b32.xlu0 %v4835_v38, %s4406_s22 }
 0xbe2   :  { %2043 = vrot.lane.b32.xlu1 %v4833_v58, %s4405_s21 }
 0xbe4   :  { %2049 = vrot.lane.b32.xlu0 %v4835_v38, %s4407_s23 }
 0xbe6   :  { %2047 = vrot.lane.b32.xlu1 %v4833_v58, %s4406_s22 }
 0xbea   :  { %2125 = vrot.lane.b32.xlu1 %v4833_v58, %s4407_s23 }
 0xc4c   :  { %v4853_v41 = vpop.permute.xlu1 %2039 }
 0xc4d   :  { %2277 = vrot.lane.b32.xlu1 %v4853_v41, %s4407_s23 }
 0xc4e   :  { %v4857_v42 = vpop.permute.xlu0 %2037 }
 0xc4f   :  { %2201 = vrot.lane.b32.xlu0 %v4857_v42, %s4407_s23 }
 0xc50   :  { %v4861_v43 = vpop.permute.xlu1 %2041 }
 0xc52   :  { %v4863_v45 = vpop.permute.xlu0 %2045 }
 0xc53   :  { %2353 = vrot.lane.b32.xlu0 %v4861_v43, %s4407_s23 }
 0xc54   :  { %v4867_v46 = vpop.permute.xlu1 %2043 }
 0xc55   :  { %2429 = vrot.lane.b32.xlu1 %v4867_v46, %s4407_s23 }
 0xc56   :  { %v2050_v47 = vpop.permute.xlu0 %2049 }
 0xc57   :  { %2505 = vrot.lane.b32.xlu0 %v4863_v45, %s4407_s23  ;;  %4144 = vmatpush3.xpose.msk.msra.mxu1 %vm208_vm6, %v2050_v47 }
 0xc58   :  { %v4874_v1 = vpop.permute.xlu1 %2047  ;;  %4148 = vmatprep.subr.mxu1 %v4402_v50 }
 0xc59   :  { %2581 = vrot.lane.b32.xlu1 %v4874_v1, %s4407_s23 }
 0xc5a   :  { %4146 = vmatmul.mubr.msk.f32.vlgmr.msra.gmra.mxu1 %vm208_vm6, %v4835_v38 }
 0xc5b   :  { %4150 = vmatprep.mubr.msk.f32.mxu1 %vm4403_vm5, %v4402_v50 }
 0xc5c   :  { %v2126_v0 = vpop.permute.xlu1 %2125 }
 0xc5d   :  { %4149 = vmatpush3.xpose.msk.msra.mxu1 %vm208_vm6, %v2126_v0 }
 0xc5e   :  { %4158 = vmatprep.subr.mxu1 %v4402_v50 }
 0xc60   :  { %4151 = vmatmul.mubr.msk.f32.vlgmr.msra.gmra.mxu1 %vm208_vm6, %v4833_v58 }
 0xc61   :  { %4160 = vmatprep.mubr.msk.f32.mxu1 %vm4403_vm5, %v4402_v50 }
 0xcbf   :  { %v2278_v51 = vpop.permute.xlu1 %2277 }
 0xcc0   :  { %4159 = vmatpush3.xpose.msk.msra.mxu1 %vm208_vm6, %v2278_v51 }
 0xcc1   :  { %v2202_v52 = vpop.permute.xlu0 %2201  ;;  %4168 = vmatprep.subr.mxu1 %v4402_v50 }
 0xcc2   :  { %4154 = vmatpush3.xpose.msk.msra.mxu0 %vm208_vm6, %v2202_v52 }
 0xcc3   :  { %4161 = vmatmul.mubr.msk.f32.vlgmr.msra.gmra.mxu1 %vm208_vm6, %v4853_v41  ;;  %4163 = vmatprep.subr.mxu0 %v4402_v50 }
 0xcc4   :  { %4170 = vmatprep.mubr.msk.f32.mxu1 %vm4403_vm5, %v4402_v50 }
 0xcc5   :  { %4156 = vmatmul.mubr.msk.f32.vlgmr.msra.gmra.mxu0 %vm208_vm6, %v4857_v42  ;;  %v2354_v53 = vpop.permute.xlu0 %2353 }
 0xcc6   :  { %4164 = vmatpush3.xpose.msk.msra.mxu0 %vm208_vm6, %v2354_v53  ;;  %4165 = vmatprep.mubr.msk.f32.mxu0 %vm4403_vm5, %v4402_v50 }
 0xcc7   :  { %v2430_v37 = vpop.permute.xlu1 %2429  ;;  %4173 = vmatprep.subr.mxu0 %v4402_v50 }
 0xcc8   :  { %4169 = vmatpush3.xpose.msk.msra.mxu1 %vm208_vm6, %v2430_v37 }
 0xcc9   :  { %4166 = vmatmul.mubr.msk.f32.vlgmr.msra.gmra.mxu0 %vm208_vm6, %v4861_v43  ;;  %v2506_v54 = vpop.permute.xlu0 %2505  ;;  %4178 = vmatprep.subr.mxu1 %v4402_v50 }
 0xcca   :  { %4174 = vmatpush3.xpose.msk.msra.mxu0 %vm208_vm6, %v2506_v54  ;;  %4175 = vmatprep.mubr.msk.f32.mxu0 %vm4403_vm5, %v4402_v50 }
 0xccb   :  { %v2582_v35 = vpop.permute.xlu1 %2581  ;;  %4171 = vmatmul.mubr.msk.f32.vlgmr.msra.gmra.mxu1 %vm208_vm6, %v4867_v46  ;;  %4183 = vmatprep.subr.mxu0 %v4402_v50 }
 0xccc   :  { %4179 = vmatpush3.xpose.msk.msra.mxu1 %vm208_vm6, %v2582_v35  ;;  %4180 = vmatprep.mubr.msk.f32.mxu1 %vm4403_vm5, %v4402_v50 }
 0xccd   :  { %4176 = vmatmul.mubr.msk.f32.vlgmr.msra.gmra.mxu0 %vm208_vm6, %v4863_v45  ;;  %4188 = vmatprep.subr.mxu1 %v4402_v50 }
 0xcce   :  { %4185 = vmatprep.mubr.msk.f32.mxu0 %vm4403_vm5, %v4402_v50 }
 0xccf   :  { %4181 = vmatmul.mubr.msk.f32.vlgmr.msra.gmra.mxu1 %vm208_vm6, %v4874_v1 }
 0xcd0   :  { %4190 = vmatprep.mubr.msk.f32.mxu1 %vm4403_vm5, %v4402_v50 }
 0xd1a   :  { %v2121_v55 = vpop.f32.mrf.mxu1 }
 0xd1b   :  { %v2657_v56 = vmul.f32 0.35355338, %v2121_v55 }
 0xd1c   :  { %v4147_v57 = vpop.f32.mrf.mxu1 }
 0xd1d   :  { %v2665_v40 = vsel %vm208_vm6, %v2657_v56, -inf }
 0xd1e   :  { %2666 = vmax.xlane.f32.xlu0 %v2665_v40 }
 0xd20   :  { %v2197_v59 = vpop.f32.mrf.mxu1 }
 0xd21   :  { %v2658_v60 = vmul.f32 0.35355338, %v2197_v59 }
 0xd22   :  { %v4152_v62 = vpop.f32.mrf.mxu1 }
 0xd23   :  { %v2668_v63 = vsel %vm208_vm6, %v2658_v60, -inf }
 0xd24   :  { %2669 = vmax.xlane.f32.xlu1 %v2668_v63 }
 0xd83   :  { %v2349_v2 = vpop.f32.mrf.mxu1 }
 0xd84   :  { %v2660_v3 = vmul.f32 0.35355338, %v2349_v2 }
 0xd85   :  { %v2273_v4 = vpop.f32.mrf.mxu0  ;;  %v4162_v5 = vpop.f32.mrf.mxu1 }
 0xd86   :  { %v2659_v6 = vmul.f32 0.35355338, %v2273_v4  ;;  %v2674_v7 = vsel %vm208_vm6, %v2660_v3, -inf }
 0xd87   :  { %2675 = vmax.xlane.f32.xlu0 %v2674_v7  ;;  %v4157_v8 = vpop.f32.mrf.mxu0 }
 0xd88   :  { %v2671_v11 = vsel %vm208_vm6, %v2659_v6, -inf }
 0xd89   :  { %v2425_v9 = vpop.f32.mrf.mxu0 }
 0xd8a   :  { %v2661_v10 = vmul.f32 0.35355338, %v2425_v9 }
 0xd8b   :  { %v2501_v12 = vpop.f32.mrf.mxu1  ;;  %2672 = vmax.xlane.f32.xlu0 %v2671_v11  ;;  %v4167_v13 = vpop.f32.mrf.mxu0 }
 0xd8c   :  { %v2662_v14 = vmul.f32 0.35355338, %v2501_v12  ;;  %v2677_v21 = vsel %vm208_vm6, %v2661_v10, -inf }
 0xd8d   :  { %v4172_v15 = vpop.f32.mrf.mxu1  ;;  %v2577_v18 = vpop.f32.mrf.mxu0 }
 0xd8e   :  { %v2663_v19 = vmul.f32 0.35355338, %v2577_v18  ;;  %v2680_v20 = vsel %vm208_vm6, %v2662_v14, -inf }
 0xd8f   :  { %2681 = vmax.xlane.f32.xlu1 %v2680_v20  ;;  %v2653_v23 = vpop.f32.mrf.mxu1  ;;  %2678 = vmax.xlane.f32.xlu0 %v2677_v21  ;;  %v4177_v24 = vpop.f32.mrf.mxu0 }
 0xd90   :  { %v2664_v25 = vmul.f32 0.35355338, %v2653_v23  ;;  %v2683_v28 = vsel %vm208_vm6, %v2663_v19, -inf }
 0xd91   :  { %v4182_v26 = vpop.f32.mrf.mxu1 }
 0xd92   :  { %v2686_v27 = vsel %vm208_vm6, %v2664_v25, -inf }
 0xd93   :  { %2687 = vmax.xlane.f32.xlu1 %v2686_v27  ;;  %2684 = vmax.xlane.f32.xlu0 %v2683_v28 }
 0xda4   :  { %2829 = vrot.lane.b32.xlu1 %v4833_v58, %s4408_s24 }
 0xda7   :  { %v2667_v29 = vpop.xlane.xlu0 %2666 }
 0xda8   :  { %2905 = vrot.lane.b32.xlu1 %v4857_v42, %s4408_s24  ;;  %v2689_v30 = vsub.f32 %v2657_v56, %v2667_v29 }
 0xda9   :  { %2753 = vrot.lane.b32.xlu0 %v4835_v38, %s4408_s24 }
 0xdaa   :  { %v2697_v33 = vmul.f32 1.442695, %v2689_v30 }
 0xdac   :  { %2981 = vrot.lane.b32.xlu1 %v4853_v41, %s4408_s24  ;;  %4332 = vpow2.f32 %v2697_v33 }
 0xdad   :  { %3057 = vrot.lane.b32.xlu0 %v4861_v43, %s4408_s24  ;;  %v2670_v34 = vpop.xlane.xlu1 %2669 }
 0xdae   :  { %v2690_v36 = vsub.f32 %v2658_v60, %v2670_v34 }
 0xdb0   :  { %3133 = vrot.lane.b32.xlu1 %v4867_v46, %s4408_s24  ;;  %v2699_v39 = vmul.f32 1.442695, %v2690_v36 }
 0xdb2   :  { %4334 = vpow2.f32 %v2699_v39 }
 0xdb9   :  { %v4945_v58 = vpop.eup %4332 }
 0xdba   :  { %v2713_v61 = vsel %vm208_vm6, %v4945_v58, 0.0 }
 0xdbf   :  { %v4949_v38 = vpop.eup %4334 }
 0xdc0   :  { %v2716_v41 = vsel %vm208_vm6, %v4949_v38, 0.0 }
 0xdcc   :  { %2714 = vadd.xlane.f32.xlu0 %v2713_v61 }
 0xdd4   :  { %2717 = vadd.xlane.f32.xlu1 %v2716_v41 }
 0xe10   :  { %v2676_v42 = vpop.xlane.xlu0 %2675 }
 0xe11   :  { %v2692_v43 = vsub.f32 %v2660_v3, %v2676_v42 }
 0xe13   :  { %v2703_v46 = vmul.f32 1.442695, %v2692_v43 }
 0xe14   :  { %v2673_v47 = vpop.xlane.xlu0 %2672 }
 0xe15   :  { %4336 = vpow2.f32 %v2703_v46  ;;  %v2691_v0 = vsub.f32 %v2659_v6, %v2673_v47 }
 0xe17   :  { %v2701_v51 = vmul.f32 1.442695, %v2691_v0 }
 0xe18   :  { %v2682_v52 = vpop.xlane.xlu1 %2681  ;;  %v2679_v53 = vpop.xlane.xlu0 %2678 }
 0xe19   :  { %4338 = vpow2.f32 %v2701_v51  ;;  %v2694_v37 = vsub.f32 %v2662_v14, %v2682_v52  ;;  %v2693_v54 = vsub.f32 %v2661_v10, %v2679_v53 }
 0xe1b   :  { %v2707_v35 = vmul.f32 1.442695, %v2694_v37  ;;  %v2705_v55 = vmul.f32 1.442695, %v2693_v54 }
 0xe1c   :  { %v2688_v56 = vpop.xlane.xlu1 %2687  ;;  %v2685_v57 = vpop.xlane.xlu0 %2684 }
 0xe1d   :  { %4340 = vpow2.f32 %v2707_v35  ;;  %v2696_v40 = vsub.f32 %v2664_v25, %v2688_v56  ;;  %v2695_v59 = vsub.f32 %v2663_v19, %v2685_v57  ;;  %v3823_v56 = vld [vmem:[%s5115_s3 + $0x68] sm:$0xff] }
 0xe1e   :  { %4342 = vpow2.f32 %v2705_v55  ;;  %v3825_v55 = vld [vmem:[%s5115_s3 + $0x78] sm:$0xff] }
 0xe1f   :  { %v2711_v60 = vmul.f32 1.442695, %v2696_v40  ;;  %v2709_v62 = vmul.f32 1.442695, %v2695_v59  ;;  %v3822_v40 = vld [vmem:[%s5115_s3 + $0x60] sm:$0xff] }
 0xe20   :  { %v2830_v63 = vpop.permute.xlu1 %2829  ;;  %v2754_v2 = vpop.permute.xlu0 %2753 }
 0xe21   :  { %4344 = vpow2.f32 %v2711_v60  ;;  %4184 = vmatpush3.msra.mxu0 %v2754_v2  ;;  %4189 = vmatpush3.msra.mxu1 %v2830_v63 }
 0xe22   :  { %v4337_v3 = vpop.eup %4336  ;;  %4346 = vpow2.f32 %v2709_v62  ;;  %4193 = vmatprep.subr.mxu0 %v4402_v50  ;;  %4198 = vmatprep.subr.mxu1 %v4402_v50 }
 0xe23   :  { %v2722_v4 = vsel %vm208_vm6, %v4337_v3, 0.0 }
 0xe24   :  { %2723 = vadd.xlane.f32.xlu1 %v2722_v4  ;;  %v2906_v15 = vpop.permute.xlu1 %2905  ;;  %v3058_v18 = vpop.permute.xlu0 %3057 }
 0xe26   :  { %v4339_v5 = vpop.eup %4338 }
 0xe27   :  { %v2719_v6 = vsel %vm208_vm6, %v4339_v5, 0.0 }
 0xe28   :  { %2720 = vadd.xlane.f32.xlu0 %v2719_v6  ;;  %v2982_v19 = vpop.permute.xlu1 %2981 }
 0xe2a   :  { %v4341_v7 = vpop.eup %4340 }
 0xe2b   :  { %v4343_v8 = vpop.eup %4342  ;;  %v2728_v9 = vsel %vm208_vm6, %v4341_v7, 0.0 }
 0xe2c   :  { %2729 = vadd.xlane.f32.xlu1 %v2728_v9  ;;  %v2725_v10 = vsel %vm208_vm6, %v4343_v8, 0.0  ;;  %v3134_v21 = vpop.permute.xlu1 %3133 }
 0xe2d   :  { %2726 = vadd.xlane.f32.xlu0 %v2725_v10 }
 0xe2e   :  { %v4959_v11 = vpop.eup %4344 }
 0xe2f   :  { %v4961_v12 = vpop.eup %4346  ;;  %v2734_v13 = vsel %vm208_vm6, %v4959_v11, 0.0 }
 0xe30   :  { %2735 = vadd.xlane.f32.xlu1 %v2734_v13  ;;  %v2731_v14 = vsel %vm208_vm6, %v4961_v12, 0.0 }
 0xe31   :  { %2732 = vadd.xlane.f32.xlu0 %v2731_v14 }
 0xe41   :  { %3285 = vrot.lane.b32.xlu1 %v4874_v1, %s4408_s24 }
 0xe47   :  { %3209 = vrot.lane.b32.xlu0 %v4863_v45, %s4408_s24 }
 0xe55   :  { %v2715_v20 = vpop.xlane.xlu0 %2714 }
 0xe56   :  { %4348 = vrcp.f32 %v2715_v20 }
 0xe5d   :  { %v2718_v23 = vpop.xlane.xlu1 %2717 }
 0xe5e   :  { %4350 = vrcp.f32 %v2718_v23 }
 0xe63   :  { %v4349_v24 = vpop.eup %4348 }
 0xe64   :  { %v2738_v25 = vmul.f32 %v4349_v24, %v4945_v58  ;;  %v3394_v24 = vrot.slane %v4818_v22, %v1553_v31 }
 0xe66   :  { %4186 = vmatmul.mubr.msk.f32.vlgmr.msra.gmra.mxu0 %vm208_vm6, %v2738_v25 }
 0xe67   :  { %4194 = vmatpush3.msra.mxu0 %v2906_v15  ;;  %4195 = vmatprep.mubr.msk.f32.mxu0 %vm4403_vm5, %v4402_v50 }
 0xe68   :  { %4203 = vmatprep.subr.mxu0 %v4402_v50 }
 0xe6b   :  { %v4351_v45 = vpop.eup %4350 }
 0xe6c   :  { %v2740_v1 = vmul.f32 %v4351_v45, %v4949_v38 }
 0xe6e   :  { %4191 = vmatmul.mubr.msk.f32.vlgmr.msra.gmra.mxu1 %vm208_vm6, %v2740_v1 }
 0xe6f   :  { %4199 = vmatpush3.msra.mxu1 %v2982_v19  ;;  %4200 = vmatprep.mubr.msk.f32.mxu1 %vm4403_vm5, %v4402_v50 }
 0xe70   :  { %4208 = vmatprep.subr.mxu1 %v4402_v50 }
 0xead   :  { %v2724_v26 = vpop.xlane.xlu1 %2723 }
 0xeae   :  { %4352 = vrcp.f32 %v2724_v26 }
 0xeb1   :  { %v2721_v27 = vpop.xlane.xlu0 %2720 }
 0xeb2   :  { %4354 = vrcp.f32 %v2721_v27 }
 0xeb5   :  { %v2730_v28 = vpop.xlane.xlu1 %2729 }
 0xeb6   :  { %4356 = vrcp.f32 %v2730_v28  ;;  %v2727_v29 = vpop.xlane.xlu0 %2726 }
 0xeb7   :  { %4358 = vrcp.f32 %v2727_v29 }
 0xeb9   :  { %v2736_v30 = vpop.xlane.xlu1 %2735 }
 0xeba   :  { %4360 = vrcp.f32 %v2736_v30  ;;  %v2733_v33 = vpop.xlane.xlu0 %2732 }
 0xebb   :  { %v4353_v34 = vpop.eup %4352  ;;  %4362 = vrcp.f32 %v2733_v33 }
 0xebc   :  { %v2744_v36 = vmul.f32 %v4353_v34, %v4337_v3 }
 0xebd   :  { %v3286_v43 = vpop.permute.xlu1 %3285 }
 0xebe   :  { %4201 = vmatmul.mubr.msk.f32.vlgmr.msra.gmra.mxu1 %vm208_vm6, %v2744_v36  ;;  %v3210_v47 = vpop.permute.xlu0 %3209 }
 0xebf   :  { %v4355_v39 = vpop.eup %4354  ;;  %4209 = vmatpush3.msra.mxu1 %v3134_v21  ;;  %4210 = vmatprep.mubr.msk.f32.mxu1 %vm4403_vm5, %v4402_v50 }
 0xec0   :  { %v2742_v58 = vmul.f32 %v4355_v39, %v4339_v5  ;;  %4218 = vmatprep.subr.mxu1 %v4402_v50 }
 0xec2   :  { %4196 = vmatmul.mubr.msk.f32.vlgmr.msra.gmra.mxu0 %vm208_vm6, %v2742_v58 }
 0xec3   :  { %v4357_v61 = vpop.eup %4356  ;;  %4204 = vmatpush3.msra.mxu0 %v3058_v18  ;;  %4205 = vmatprep.mubr.msk.f32.mxu0 %vm4403_vm5, %v4402_v50 }
 0xec4   :  { %v4359_v38 = vpop.eup %4358  ;;  %4213 = vmatprep.subr.mxu0 %v4402_v50  ;;  %v2748_v41 = vmul.f32 %v4357_v61, %v4341_v7 }
 0xec5   :  { %v2746_v42 = vmul.f32 %v4359_v38, %v4343_v8 }
 0xec6   :  { %4211 = vmatmul.mubr.msk.f32.vlgmr.msra.gmra.mxu1 %vm208_vm6, %v2748_v41  ;;  %v3871_v41 = vld [vmem:[%s5116_s4 + $0x38] sm:$0xff] }
 0xec7   :  { %v4361_v46 = vpop.eup %4360  ;;  %4206 = vmatmul.mubr.msk.f32.vlgmr.msra.gmra.mxu0 %vm208_vm6, %v2746_v42  ;;  %4219 = vmatpush3.msra.mxu1 %v3286_v43  ;;  %v3870_v42 = vld [vmem:[%s5116_s4 + $0x30] sm:$0xff]  ;;  %v3869_v43 = vld [vmem:[%s5116_s4 + $0x28] sm:$0xff] }
 0xec8   :  { %v4363_v0 = vpop.eup %4362  ;;  %4214 = vmatpush3.msra.mxu0 %v3210_v47  ;;  %4215 = vmatprep.mubr.msk.f32.mxu0 %vm4403_vm5, %v4402_v50  ;;  %v2752_v51 = vmul.f32 %v4361_v46, %v4959_v11  ;;  %v3868_v46 = vld [vmem:[%s5116_s4 + $0x20] sm:$0xff]  ;;  %v3833_v47 = vld [vmem:[%s5115_s3 + $0xb8] sm:$0xff] }
 0xec9   :  { %4220 = vmatprep.mubr.msk.f32.mxu1 %vm4403_vm5, %v4402_v50  ;;  %v2750_v52 = vmul.f32 %v4363_v0, %v4961_v12  ;;  %4223 = vmatprep.subr.mxu0 %v3825_v55  ;;  %v3824_v50 = vld [vmem:[%s5115_s3 + $0x70] sm:$0xff] }
 0xeca   :  { %4221 = vmatmul.mubr.msk.f32.vlgmr.msra.gmra.mxu1 %vm208_vm6, %v2752_v51  ;;  %4234 = vmatprep.subr.mxu1 %v3871_v41  ;;  %v3832_v0 = vld [vmem:[%s5115_s3 + $0xb0] sm:$0xff]  ;;  %v3831_v51 = vld [vmem:[%s5115_s3 + $0xa8] sm:$0xff] }
 0xecb   :  { %4216 = vmatmul.mubr.msk.f32.vlgmr.msra.gmra.mxu0 %vm208_vm6, %v2750_v52  ;;  %4235 = vmatpush3.msra.mxu1 %v3871_v41  ;;  %v3830_v52 = vld [vmem:[%s5115_s3 + $0xa0] sm:$0xff] }
 0xecc   :  { %4224 = vmatpush3.msra.mxu0 %v3825_v55  ;;  %4236 = vmatprep.subr.mxu1 %v3870_v42 }
 0xecd   :  { %4225 = vmatprep.subr.mxu0 %v3824_v50  ;;  %4237 = vmatpush3.msra.mxu1 %v3870_v42 }
 0xece   :  { %4226 = vmatpush3.msra.mxu0 %v3824_v50  ;;  %4238 = vmatprep.subr.mxu1 %v3869_v43 }
 0xecf   :  { %4227 = vmatprep.subr.mxu0 %v3823_v56  ;;  %4239 = vmatpush3.msra.mxu1 %v3869_v43 }
 0xed0   :  { %4228 = vmatpush3.msra.mxu0 %v3823_v56  ;;  %4240 = vmatprep.subr.mxu1 %v3868_v46 }
 0xed1   :  { %4229 = vmatprep.subr.mxu0 %v3822_v40  ;;  %4241 = vmatpush3.msra.mxu1 %v3868_v46 }
 0xed2   :  { %4230 = vmatpush3.msra.mxu0 %v3822_v40 }
 0xed3   :  { %4245 = vmatprep.subr.mxu0 %v3833_v47 }
 0xf26   :  { %v2825_v53 = vpop.f32.mrf.mxu0 }
 0xf28   :  { %v4187_v37 = vpop.f32.mrf.mxu0 }
 0xf2e   :  { %v2901_v54 = vpop.f32.mrf.mxu1 }
 0xf30   :  { %v4192_v35 = vpop.f32.mrf.mxu1 }
 0xf7e   :  { %v3053_v57 = vpop.f32.mrf.mxu1 }
 0xf7f   :  { %3365 = vrot.lane.b32.xlu1 %v3053_v57, %s4409_s0 }
 0xf80   :  { %v4202_v59 = vpop.f32.mrf.mxu1 }
 0xf82   :  { %v2977_v60 = vpop.f32.mrf.mxu0 }
 0xf83   :  { %3363 = vrot.lane.b32.xlu0 %v2977_v60, %s4409_s0 }
 0xf84   :  { %v4197_v62 = vpop.f32.mrf.mxu0 }
 0xf86   :  { %v3205_v63 = vpop.f32.mrf.mxu1 }
 0xf87   :  { %v3129_v2 = vpop.f32.mrf.mxu0  ;;  %3373 = vrot.lane.b32.xlu1 %v3205_v63, %s4410_s11 }
 0xf88   :  { %3371 = vrot.lane.b32.xlu0 %v3129_v2, %s4410_s11  ;;  %v4212_v3 = vpop.f32.mrf.mxu1 }
 0xf89   :  { %v4207_v4 = vpop.f32.mrf.mxu0 }
 0xf8a   :  { %v3357_v5 = vpop.f32.mrf.mxu1 }
 0xf8b   :  { %v3281_v6 = vpop.f32.mrf.mxu0  ;;  %3381 = vrot.lane.b32.xlu1 %v3357_v5, %s4411_s12  ;;  %v3515_v5 = vrot.slane %v4818_v22, %v1674_v16  ;;  %v3829_v16 = vld [vmem:[%s5115_s3 + $0x98] sm:$0xff] }
 0xf8c   :  { %3379 = vrot.lane.b32.xlu0 %v3281_v6, %s4411_s12  ;;  %v4222_v7 = vpop.f32.mrf.mxu1 }
 0xf8d   :  { %v4217_v8 = vpop.f32.mrf.mxu0  ;;  %v3527_v7 = vrot.slane %v4818_v22, %v1686_v17  ;;  %v3828_v17 = vld [vmem:[%s5115_s3 + $0x90] sm:$0xff] }
 0xff1   :  { %v3366_v9 = vpop.permute.xlu1 %3365 }
 0xff2   :  { %v3386_v13 = vsel %vm208_vm6, %v2901_v54, %v3366_v9 }
 0xff5   :  { %v3364_v10 = vpop.permute.xlu0 %3363 }
 0xff6   :  { %v3385_v14 = vsel %vm208_vm6, %v2825_v53, %v3364_v10 }
 0xff9   :  { %v3374_v11 = vpop.permute.xlu1 %3373 }
 0xffa   :  { %v3372_v12 = vpop.permute.xlu0 %3371  ;;  %v3388_v15 = vsel %vm1545_vm7, %v3386_v13, %v3374_v11 }
 0xffb   :  { %v3387_v19 = vsel %vm1545_vm7, %v3385_v14, %v3372_v12 }
 0xffd   :  { %v3382_v18 = vpop.permute.xlu1 %3381 }
 0xffe   :  { %v3390_v20 = vsel %vm1548_vm8, %v3388_v15, %v3382_v18  ;;  %v3380_v21 = vpop.permute.xlu0 %3379  ;;  %v3827_v15 = vld [vmem:[%s5115_s3 + $0x88] sm:$0xff]  ;;  %v3826_v18 = vld [vmem:[%s5115_s3 + $0x80] sm:$0xff] }
 0xfff   :  { %v3389_v23 = vsel %vm1548_vm8, %v3387_v19, %v3380_v21  ;;  %v3873_v19 = vld [vmem:[%s5117_s5 + $0x1] ss:$0 sm:$0xff] }
0x1000   :  { %4231 = vmatprep.mubr.msk.f32.mxu0 %vm45_vm0, %v3389_v23 }
0x1001   :  { %4232 = vmatmul.mubr.msk.f32.vlgmr.msra.gmra.mxu0 %vm45_vm0, %v3390_v20 }
0x1002   :  { %4246 = vmatpush3.msra.mxu0 %v3833_v47 }
0x1003   :  { %4247 = vmatprep.subr.mxu0 %v3832_v0 }
0x1004   :  { %4248 = vmatpush3.msra.mxu0 %v3832_v0 }
0x1005   :  { %4249 = vmatprep.subr.mxu0 %v3831_v51 }
0x1006   :  { %4250 = vmatpush3.msra.mxu0 %v3831_v51 }
0x1007   :  { %4251 = vmatprep.subr.mxu0 %v3830_v52 }
0x1008   :  { %4252 = vmatpush3.msra.mxu0 %v3830_v52 }
0x1009   :  { %4253 = vmatprep.subr.mxu0 %v3829_v16 }
0x100a   :  { %4254 = vmatpush3.msra.mxu0 %v3829_v16 }
0x100b   :  { %4255 = vmatprep.subr.mxu0 %v3828_v17 }
0x100c   :  { %4256 = vmatpush3.msra.mxu0 %v3828_v17 }
0x100d   :  { %4257 = vmatprep.subr.mxu0 %v3827_v15 }
0x100e   :  { %4258 = vmatpush3.msra.mxu0 %v3827_v15 }
0x100f   :  { %4259 = vmatprep.subr.mxu0 %v3826_v18 }
0x1010   :  { %4260 = vmatpush3.msra.mxu0 %v3826_v18 }
0x10c1   :  { %v4233_v25 = vpop.f32.mrf.mxu0 }
0x10c2   :  { %v3473_v45 = vadd.f32 %v4233_v25, %v3394_v24 }
0x10c3   :  { %v3467_v1 = vpop.f32.mrf.mxu0 }
0x10c4   :  { %v5029_v26 = vadd.f32 %v3473_v45, %v4789_v48  ;;  %v3468_v27 = vadd.f32 %v3467_v1, %v3394_v24  ;;  %v3712_v1 = vrot.slane %v4818_v22, %v1870_v44 }
0x10c6   :  { %v5032_v28 = vadd.f32 %v3468_v27, %v4792_v49  ;;  %v3481_v29 = vsel %vm45_vm0, %v5029_v26, 0.0 }
0x10c7   :  { %3482 = vadd.xlane.f32.xlu1 %v3481_v29 }
0x10c8   :  { %v3478_v30 = vsel %vm45_vm0, %v5032_v28, 0.0 }
0x10c9   :  { %3479 = vadd.xlane.f32.xlu0 %v3478_v30 }
0x1150   :  { %v3483_v33 = vpop.xlane.xlu1 %3482 }
0x1151   :  { %v3485_v31 = vmul.f32 0.03125, %v3483_v33 }
0x1152   :  { %v3480_v34 = vpop.xlane.xlu0 %3479 }
0x1153   :  { %v3484_v36 = vmul.f32 0.03125, %v3480_v34  ;;  %v3487_v39 = vsub.f32 %v5029_v26, %v3485_v31 }
0x1155   :  { %v3486_v48 = vsub.f32 %v5032_v28, %v3484_v36  ;;  %v3489_v61 = vmul.f32 %v3487_v39, %v3487_v39  ;;  %v3517_v10 = vmul.f32 %v3515_v5, %v3487_v39 }
0x1157   :  { %v3488_v58 = vmul.f32 %v3486_v48, %v3486_v48  ;;  %v3493_v38 = vsel %vm45_vm0, %v3489_v61, 0.0  ;;  %v3516_v6 = vmul.f32 %v3515_v5, %v3486_v48 }
0x1159   :  { %v3490_v49 = vsel %vm45_vm0, %v3488_v58, 0.0 }
0x115a   :  { %3491 = vadd.xlane.f32.xlu0 %v3490_v49 }
0x115e   :  { %3494 = vadd.xlane.f32.xlu0 %v3493_v38 }
0x11e3   :  { %v3492_v53 = vpop.xlane.xlu0 %3491 }
0x11e4   :  { %v3496_v37 = vmul.f32 0.032258064, %v3492_v53 }
0x11e6   :  { %4364 = vrsqrt.f32 %v3496_v37  ;;  %vm3500_vm3 = vcmp.eq.f32.partialorder %v3496_v37, inf  ;;  %v3503_v56 = vand.u32 2147483648, %v3496_v37  ;;  %vm3502_vm4 = vcmp.eq.f32.partialorder %v3496_v37, 0.0 }
0x11e7   :  { %v3495_v54 = vpop.xlane.xlu0 %3494 }
0x11e8   :  { %v3497_v35 = vmul.f32 0.032258064, %v3495_v54 }
0x11ea   :  { %4366 = vrsqrt.f32 %v3497_v35  ;;  %vm3507_vm5 = vcmp.eq.f32.partialorder %v3497_v35, inf  ;;  %v3510_v63 = vand.u32 2147483648, %v3497_v35  ;;  %vm3509_vm6 = vcmp.eq.f32.partialorder %v3497_v35, 0.0 }
0x11f3   :  { %v4365_v55 = vpop.eup %4364 }
0x11f4   :  { %v3499_v50 = vmul.f32 %v4365_v55, %v3496_v37 }
0x11f6   :  { %v3501_v57 = vsel %vm3500_vm3, %v3496_v37, %v3499_v50 }
0x11f7   :  { %v4367_v40 = vpop.eup %4366  ;;  %v3504_v59 = vsel %vm3502_vm4, %v3503_v56, %v3501_v57 }
0x11f8   :  { %v3518_v60 = vadd.f32 1e-06, %v3504_v59  ;;  %v3506_v62 = vmul.f32 %v4367_v40, %v3497_v35  ;;  %v3878_v40 = vld [vmem:[%s5119_s7] ss:$0 sm:$0xff] }
0x11fa   :  { %4368 = vrcp.f32 %v3518_v60  ;;  %v3508_v2 = vsel %vm3507_vm5, %v3497_v35, %v3506_v62  ;;  %v3879_v62 = vld [vmem:[%s5119_s7 + $0x1] ss:$0 sm:$0xff] }
0x11fb   :  { %v3511_v3 = vsel %vm3509_vm6, %v3510_v63, %v3508_v2 }
0x11fc   :  { %v3519_v4 = vadd.f32 1e-06, %v3511_v3 }
0x11fe   :  { %4370 = vrcp.f32 %v3519_v4 }
0x1207   :  { %v4369_v8 = vpop.eup %4368 }
0x1208   :  { %v3521_v9 = vmul.f32 %v4369_v8, %v3516_v6 }
0x120a   :  { %v3528_v11 = vadd.f32 %v3527_v7, %v3521_v9 }
0x120b   :  { %v4371_v12 = vpop.eup %4370 }
0x120c   :  { %v3523_v13 = vmul.f32 %v4371_v12, %v3517_v10  ;;  %4242 = vmatprep.mubr.msk.f32.mxu1 %vm45_vm0, %v3528_v11 }
0x120e   :  { %v3529_v14 = vadd.f32 %v3527_v7, %v3523_v13 }
0x1210   :  { %4243 = vmatmul.mubr.msk.f32.vlgmr.msra.gmra.mxu1 %vm45_vm0, %v3529_v14 }
0x12d0   :  { %v4244_v20 = vpop.f32.mrf.mxu1 }
0x12d1   :  { %v3621_v21 = vadd.f32 %v4244_v20, %v3873_v19 }
0x12d2   :  { %v3615_v23 = vpop.f32.mrf.mxu1 }
0x12d3   :  { %v3616_v24 = vadd.f32 %v3873_v19, %v3615_v23  ;;  %v3625_v45 = vmax.f32 %v3621_v21, 0.0 }
0x12d5   :  { %v3624_v25 = vmax.f32 %v3616_v24, 0.0 }
0x12d7   :  { %4261 = vmatprep.mubr.msk.f32.mxu0 %vm1784_vm13, %v3624_v25 }
0x12d8   :  { %4262 = vmatmul.mubr.msk.f32.vlgmr.msra.gmra.mxu0 %vm1784_vm13, %v3625_v45 }
0x1398   :  { %v4263_v27 = vpop.f32.mrf.mxu0 }
0x1399   :  { %v3708_v29 = vadd.f32 %v4263_v27, %v5029_v26 }
0x139a   :  { %v3698_v30 = vpop.f32.mrf.mxu0 }
0x139b   :  { %v3714_v33 = vadd.f32 %v3712_v1, %v3708_v29  ;;  %v3707_v31 = vadd.f32 %v3698_v30, %v5032_v28 }
0x139d   :  { %v3713_v34 = vadd.f32 %v3712_v1, %v3707_v31  ;;  %v3720_v36 = vsel %vm45_vm0, %v3714_v33, 0.0 }
0x139e   :  { %3721 = vadd.xlane.f32.xlu1 %v3720_v36 }
0x139f   :  { %v3717_v39 = vsel %vm45_vm0, %v3713_v34, 0.0 }
0x13a0   :  { %3718 = vadd.xlane.f32.xlu0 %v3717_v39 }
0x1427   :  { %v3722_v48 = vpop.xlane.xlu1 %3721 }
0x1428   :  { %v3724_v58 = vmul.f32 0.03125, %v3722_v48 }
0x1429   :  { %v3719_v49 = vpop.xlane.xlu0 %3718 }
0x142a   :  { %v3726_v32 = vsub.f32 %v3714_v33, %v3724_v58  ;;  %v3723_v61 = vmul.f32 0.03125, %v3719_v49 }
0x142c   :  { %v3725_v44 = vsub.f32 %v3713_v34, %v3723_v61  ;;  %v3728_v22 = vmul.f32 %v3726_v32, %v3726_v32  ;;  %v3756_v59 = vmul.f32 %v3878_v40, %v3726_v32 }
0x142e   :  { %v3732_v26 = vsel %vm45_vm0, %v3728_v22, 0.0  ;;  %v3727_v38 = vmul.f32 %v3725_v44, %v3725_v44  ;;  %v3755_v2 = vmul.f32 %v3878_v40, %v3725_v44 }
0x142f   :  { %3733 = vadd.xlane.f32.xlu1 %v3732_v26 }
0x1430   :  { %v3729_v28 = vsel %vm45_vm0, %v3727_v38, 0.0 }
0x1431   :  { %3730 = vadd.xlane.f32.xlu0 %v3729_v28 }
0x14b8   :  { %v3734_v41 = vpop.xlane.xlu1 %3733 }
0x14b9   :  { %v3736_v42 = vmul.f32 0.032258064, %v3734_v41 }
0x14ba   :  { %v3731_v43 = vpop.xlane.xlu0 %3730 }
0x14bb   :  { %4372 = vrsqrt.f32 %v3736_v42  ;;  %v3735_v46 = vmul.f32 0.032258064, %v3731_v43  ;;  %vm3746_vm7 = vcmp.eq.f32.partialorder %v3736_v42, inf  ;;  %v3749_v51 = vand.u32 2147483648, %v3736_v42 }
0x14bc   :  { %vm3748_vm8 = vcmp.eq.f32.partialorder %v3736_v42, 0.0 }
0x14bd   :  { %4374 = vrsqrt.f32 %v3735_v46  ;;  %vm3739_vm9 = vcmp.eq.f32.partialorder %v3735_v46, inf  ;;  %v3742_v55 = vand.u32 2147483648, %v3735_v46  ;;  %vm3741_vm10 = vcmp.eq.f32.partialorder %v3735_v46, 0.0 }
0x14c8   :  { %v4373_v47 = vpop.eup %4372 }
0x14c9   :  { %v3745_v0 = vmul.f32 %v4373_v47, %v3736_v42 }
0x14ca   :  { %v4375_v52 = vpop.eup %4374 }
0x14cb   :  { %v3747_v53 = vsel %vm3746_vm7, %v3736_v42, %v3745_v0  ;;  %v3738_v54 = vmul.f32 %v4375_v52, %v3735_v46 }
0x14cc   :  { %v3750_v37 = vsel %vm3748_vm8, %v3749_v51, %v3747_v53 }
0x14cd   :  { %v3758_v35 = vadd.f32 1e-06, %v3750_v37  ;;  %v3740_v50 = vsel %vm3739_vm9, %v3735_v46, %v3738_v54 }
0x14ce   :  { %v3743_v56 = vsel %vm3741_vm10, %v3742_v55, %v3740_v50 }
0x14cf   :  { %4376 = vrcp.f32 %v3758_v35  ;;  %v3757_v57 = vadd.f32 1e-06, %v3743_v56 }
0x14d1   :  { %4378 = vrcp.f32 %v3757_v57 }
0x14dc   :  { %v4377_v60 = vpop.eup %4376 }
0x14dd   :  { %v3762_v63 = vmul.f32 %v4377_v60, %v3756_v59 }
0x14de   :  { %v4379_v3 = vpop.eup %4378 }
0x14df   :  { %v3768_v4 = vadd.f32 %v3879_v62, %v3762_v63  ;;  %v3760_v5 = vmul.f32 %v4379_v3, %v3755_v2 }
0x14e1   :  { %3770 = vst.msk [vmem:[#allocation2 + $0x8] sm:$0xff] %vm45_vm0, %v3768_v4  ;;  %v3767_v6 = vadd.f32 %v3879_v62, %v3760_v5 }
0x14e3   :  { %3769 = vst.msk [vmem:[#allocation2] sm:$0xff] %vm45_vm0, %v3767_v6 }
0x14e4   :  { %4391 = shalt.err (!%p4388_p4)
}
0x14e5   :  { %s4413_s7 = smov 128  }
0x14e6   :  { %3782 = dma.vmem_to_hbm [thread:$0]  %s3777_s27, 256, %s5120_s8, [#allocation3], %s4413_s7, %s4413_s7, %s4409_s0  }
0x14e7   :  { %4400 = dma.done.wait [#allocation3], 256  }
0x14e8   :  { %4401 = vsyncadd [#allocation3], 4294967040 }
0x14e9   :  { %3786 = vsyncpa [#allocation3], 1 }

</bundles_post_ra>
